<compile_context>
chip_gen: v7x
topology: tpu7x:2x2x1
jax: 0.10.0
libtpu: 0.0.40
codegen_flags: <defaults>
</compile_context>

<pallas_src>
import jax
import jax.numpy as jnp
from jax.experimental import pallas as pl
from jax.experimental.pallas import tpu as pltpu


def bert_classifier_kernel(hs_ref, mask_ref, w_ref, b_ref, out_ref, acc_ref, cnt_ref):
    # hs_ref:   (bm, bs, H)  native dtype (f32 or bf16) -- last_hidden_state tile
    # mask_ref: (bm, bs)     bf16 {0,1}                 -- attention_mask tile
    # w_ref:    (H, C)       f32                        -- classifier weight (resident)
    # b_ref:    (1, C)       f32                        -- classifier bias   (resident)
    # out_ref:  (bm, C)      f32                        -- logits tile (resident across seq axis)
    # acc_ref:  (bm, H)      f32 scratch                -- masked-sum accumulator
    # cnt_ref:  (bm, 1)      f32 scratch                -- token-count accumulator
    s = pl.program_id(1)

    @pl.when(s == 0)
    def _init():
        acc_ref[...] = jnp.zeros_like(acc_ref)
        cnt_ref[...] = jnp.zeros_like(cnt_ref)

    bm, bs = mask_ref.shape
    H = hs_ref.shape[-1]
    m = mask_ref[...]                                              # (bm, bs) bf16

    # Block-diagonal selector: sel[r, j] = m[r, j % bs] if (r*bs <= j < r*bs + bs) else 0.
    # Built with a lane-concat (no sublane->lane reshape) + two iota compares.
    m_rep = jnp.concatenate([m] * bm, axis=1)                      # (bm, bm*bs): [r,j]=m[r,j%bs]
    r_ids = jax.lax.broadcasted_iota(jnp.int32, (bm, bm * bs), 0)
    j_ids = jax.lax.broadcasted_iota(jnp.int32, (bm, bm * bs), 1)
    r_start = r_ids * bs
    in_block = (j_ids >= r_start) & (j_ids < r_start + bs)
    sel = jnp.where(in_block, m_rep, jnp.zeros_like(m_rep))        # (bm, bm*bs) bf16

    # Single MXU contraction: masked sum over this sequence tile, f32 accumulate.
    hs_bf = hs_ref[...].reshape(bm * bs, H).astype(jnp.bfloat16)   # leading-dim merge is free
    acc_ref[...] += jnp.dot(sel, hs_bf, preferred_element_type=jnp.float32)
    cnt_ref[...] += jnp.sum(m.astype(jnp.float32), axis=1, keepdims=True)

    @pl.when(s == pl.num_programs(1) - 1)
    def _finalize():
        ssum = acc_ref[...]                                        # (bm, H) f32 masked sum
        cnt = cnt_ref[...]                                         # (bm, 1) f32 token counts
        # torch: pooled = ssum/cnt; F.normalize(pooled, p=2, dim=1, eps=1e-12)
        #      == ssum * rsqrt(max(||ssum||^2, (cnt*1e-12)^2))   (division cancels exactly)
        sq = jnp.sum(ssum * ssum, axis=1, keepdims=True)
        floor = cnt * 1e-12
        normalized = ssum * jax.lax.rsqrt(jnp.maximum(sq, floor * floor))
        logits = jnp.dot(normalized, w_ref[...],
                         preferred_element_type=jnp.float32) + b_ref[...]
        out_ref[...] = logits.astype(out_ref.dtype)


def bert_classifier_forward(last_hidden_state, attention_mask, w, b, *,
                            bm=None, bs=None, vmem_budget_bytes=40 * 1024 * 1024):
    """last_hidden_state: (B,S,H) (any float dtype, consumed as-is), attention_mask: (B,S) {0,1},
       w: (C,H) (torch nn.Linear layout), b: (C,).  Returns (B,C) f32 logits."""
    B, S, H = last_hidden_state.shape
    C = w.shape[0]
    hs = last_hidden_state                         # NO wrapper repack; kernel casts in-body
    itemsize = jnp.dtype(hs.dtype).itemsize

    # --- tile selection: whole-sequence blocks when they fit, multi-MiB hs DMAs,
    #     >= 2 batch tiles when B allows (v7x megacore), double-buffered hs under budget.
    if bs is None:
        bs = S
        while (2 * 8 * bs * H * itemsize > vmem_budget_bytes
               and bs % 2 == 0 and (bs // 2) % 128 == 0 and S % (bs // 2) == 0):
            bs //= 2
    if bm is None:
        if B <= 8 or B % 8 != 0:
            bm = B                                 # full-batch block (always layout-legal)
        else:
            bm = 8
            while (B % (bm * 2) == 0 and B // (bm * 2) >= 2
                   and 2 * (bm * 2) * bs * H * itemsize <= vmem_budget_bytes):
                bm *= 2
    assert B % bm == 0 and S % bs == 0, "tile sizes must divide (B, S)"
    assert bs % 8 == 0, "sequence tile must be a multiple of 8"
    assert bs == S or bs % 128 == 0, "partial sequence tiles must be multiples of 128"

    mask = attention_mask.astype(jnp.bfloat16)     # {0,1} exact in bf16; tiny HBM traffic
    w_t = w.T.astype(jnp.float32)                  # (H, C) resident
    b2 = b.reshape(1, C).astype(jnp.float32)

    grid = (B // bm, S // bs)

    # VMEM plan estimate (double-buffered hs/mask/out + resident params + scratch), with slack.
    est = (2 * bm * bs * H * itemsize + 2 * bm * bs * 2
           + H * C * 4 + C * 4 + 2 * bm * C * 4 + bm * H * 4 + bm * 4)
    vmem_limit = min(max(2 * est, 32 * 1024 * 1024), 64 * 1024 * 1024)

    return pl.pallas_call(
        bert_classifier_kernel,
        out_shape=jax.ShapeDtypeStruct((B, C), jnp.float32),
        grid_spec=pltpu.PrefetchScalarGridSpec(
            num_scalar_prefetch=0,
            grid=grid,
            in_specs=[
                pl.BlockSpec((bm, bs, H), lambda bi, si: (bi, si, 0)),   # hs tile (native dtype)
                pl.BlockSpec((bm, bs),    lambda bi, si: (bi, si)),      # mask tile
                pl.BlockSpec((H, C),      lambda bi, si: (0, 0)),        # weight (resident)
                pl.BlockSpec((1, C),      lambda bi, si: (0, 0)),        # bias (resident)
            ],
            out_specs=pl.BlockSpec((bm, C), lambda bi, si: (bi, 0)),     # logits tile
            scratch_shapes=[
                pltpu.VMEM((bm, H), jnp.float32),   # masked-sum accumulator
                pltpu.VMEM((bm, 1), jnp.float32),   # token counts
            ],
        ),
        compiler_params=pltpu.CompilerParams(
            dimension_semantics=("parallel", "arbitrary"),
            vmem_limit_bytes=vmem_limit,
        ),
    )(hs, mask, w_t, b2)


def reference_forward(last_hidden_state, attention_mask, w, b):
    hs = last_hidden_state.astype(jnp.float32)
    mask = attention_mask.astype(jnp.float32)
    masked = hs * mask[..., None]
    pooled = masked.sum(axis=1) / mask.sum(axis=1, keepdims=True)
    norm = jnp.sqrt(jnp.sum(pooled * pooled, axis=1, keepdims=True))
    normalized = pooled / jnp.maximum(norm, 1e-12)
    return normalized @ w.T.astype(jnp.float32) + b.astype(jnp.float32)


if __name__ == "__main__":
    # Small but tiling-friendly shapes: batch=16, seq=256, hidden=128, classes=8.
    B, S, H, C = 16, 256, 128, 8

    key = jax.random.PRNGKey(0)
    k_hs, k_w, k_b = jax.random.split(key, 3)

    # Synthetic base_model output (last_hidden_state) and variable-length attention mask.
    last_hidden_state = jax.random.normal(k_hs, (B, S, H), dtype=jnp.float32)
    lengths = 16 + (jnp.arange(B) * 29) % (S - 16)            # every row has >= 16 valid tokens
    attention_mask = (jnp.arange(S)[None, :] < lengths[:, None]).astype(jnp.float32)

    # Deterministic classifier params (nn.Linear(H, C), torch layout).
    w = jax.random.normal(k_w, (C, H), dtype=jnp.float32) * 0.05
    b = jax.random.normal(k_b, (C,), dtype=jnp.float32) * 0.01

    # Reference accounts for the in-kernel bf16 rounding of the hidden states.
    hs_bf = last_hidden_state.astype(jnp.bfloat16).astype(jnp.float32)
    ref = reference_forward(hs_bf, attention_mask, w, b)

    # 1) Default tiling: bs = S (reduction axis collapses), bm = 8 -> 2 batch tiles.
    logits = bert_classifier_forward(last_hidden_state, attention_mask, w, b)
    logits = jax.block_until_ready(logits)
    assert logits.shape == (B, C)
    assert jnp.allclose(logits, ref, atol=1e-3, rtol=1e-3), (logits, ref)

    # 2) Explicit sequence tiling to exercise the multi-step accumulator path.
    logits2 = bert_classifier_forward(last_hidden_state, attention_mask, w, b, bm=8, bs=128)
    logits2 = jax.block_until_ready(logits2)
    assert jnp.allclose(logits2, ref, atol=1e-3, rtol=1e-3), (logits2, ref)

    print("KERNEL_OK")
</pallas_src>

<mosaic_0001>
module attributes {stable_mosaic.version = 11 : i64} {
  func.func @bert_classifier_kernel(%arg0: i32, %arg1: i32, %arg2: memref<8x256x128xf32, #tpu.memory_space<vmem>>, %arg3: memref<8x256xbf16, #tpu.memory_space<vmem>>, %arg4: memref<128x8xf32, #tpu.memory_space<vmem>>, %arg5: memref<1x8xf32, #tpu.memory_space<vmem>>, %arg6: memref<8x8xf32, #tpu.memory_space<vmem>>, %arg7: memref<8x128xf32, #tpu.memory_space<vmem>>, %arg8: memref<8x1xf32, #tpu.memory_space<vmem>>) attributes {dimension_semantics = [#tpu.dimension_semantics<parallel>, #tpu.dimension_semantics<arbitrary>], iteration_bounds = array<i64: 2, 1>, scalar_prefetch = 0 : i64, scratch_operands = 2 : i64, tpu.core_type = #tpu.core_type<tc>, window_params = [{transform_indices = @transform_0, window_bounds = array<i64: 8, 256, 128>}, {transform_indices = @transform_1, window_bounds = array<i64: 8, 256>}, {pipeline_mode = #tpu.pipeline_mode<synchronous>, transform_indices = @transform_2, window_bounds = array<i64: 128, 8>}, {pipeline_mode = #tpu.pipeline_mode<synchronous>, transform_indices = @transform_3, window_bounds = array<i64: 1, 8>}, {transform_indices = @transform_4, window_bounds = array<i64: 8, 8>}]} {
    %c0_i32 = arith.constant 0 : i32
    %0 = arith.cmpi eq, %arg1, %c0_i32 : i32
    %1 = arith.extui %0 : i1 to i32
    %c0_i32_0 = arith.constant 0 : i32
    %2 = arith.cmpi ne, %1, %c0_i32_0 : i32
    scf.if %2 {
      %cst_18 = arith.constant 0.000000e+00 : f32
      %32 = vector.broadcast %cst_18 : f32 to vector<8x128xf32>
      %c0_19 = arith.constant 0 : index
      %c0_20 = arith.constant 0 : index
      %33 = vector.load %arg7[%c0_19, %c0_20] : memref<8x128xf32, #tpu.memory_space<vmem>>, vector<8x128xf32>
      tpu.vector_store %arg7[%c0_19, %c0_20], %32 {strides = array<i32>} : memref<8x128xf32, #tpu.memory_space<vmem>>, vector<8x128xf32>,
      %cst_21 = arith.constant 0.000000e+00 : f32
      %34 = vector.broadcast %cst_21 : f32 to vector<8x1xf32>
      %c0_22 = arith.constant 0 : index
      %c0_23 = arith.constant 0 : index
      %35 = vector.load %arg8[%c0_22, %c0_23] : memref<8x1xf32, #tpu.memory_space<vmem>>, vector<8x1xf32>
      tpu.vector_store %arg8[%c0_22, %c0_23], %34 {strides = array<i32>} : memref<8x1xf32, #tpu.memory_space<vmem>>, vector<8x1xf32>,
    } else {
    }
    %c0 = arith.constant 0 : index
    %c0_1 = arith.constant 0 : index
    %3 = vector.load %arg3[%c0, %c0_1] : memref<8x256xbf16, #tpu.memory_space<vmem>>, vector<8x256xbf16>
    %4 = tpu.concatenate %3, %3, %3, %3, %3, %3, %3, %3 in 1 : vector<8x256xbf16>, vector<8x256xbf16>, vector<8x256xbf16>, vector<8x256xbf16>, vector<8x256xbf16>, vector<8x256xbf16>, vector<8x256xbf16>, vector<8x256xbf16> -> vector<8x2048xbf16>
    %5 = tpu.iota {dimensions = array<i32: 0>} : vector<8x2048xi32>
    %6 = tpu.iota {dimensions = array<i32: 1>} : vector<8x2048xi32>
    %c256_i32 = arith.constant 256 : i32
    %7 = vector.broadcast %c256_i32 : i32 to vector<8x2048xi32>
    %8 = arith.muli %5, %7 : vector<8x2048xi32>
    %9 = arith.cmpi sge, %6, %8 : vector<8x2048xi32>
    %c256_i32_2 = arith.constant 256 : i32
    %10 = vector.broadcast %c256_i32_2 : i32 to vector<8x2048xi32>
    %11 = arith.addi %8, %10 : vector<8x2048xi32>
    %12 = arith.cmpi slt, %6, %11 : vector<8x2048xi32>
    %13 = arith.andi %9, %12 : vector<8x2048xi1>
    %cst = arith.constant 0.000000e+00 : bf16
    %14 = vector.broadcast %cst : bf16 to vector<8x2048xbf16>
    %15 = arith.select %13, %4, %14 : vector<8x2048xi1>, vector<8x2048xbf16>
    %c0_3 = arith.constant 0 : index
    %c0_4 = arith.constant 0 : index
    %c0_5 = arith.constant 0 : index
    %16 = vector.load %arg2[%c0_3, %c0_4, %c0_5] : memref<8x256x128xf32, #tpu.memory_space<vmem>>, vector<8x256x128xf32>
    %17 = vector.shape_cast %16 : vector<8x256x128xf32> to vector<2048x128xf32>
    %18 = arith.truncf %17 : vector<2048x128xf32> to vector<2048x128xbf16>
    %c0_6 = arith.constant 0 : index
    %c0_7 = arith.constant 0 : index
    %19 = vector.load %arg7[%c0_6, %c0_7] : memref<8x128xf32, #tpu.memory_space<vmem>>, vector<8x128xf32>
    %cst_8 = arith.constant dense<0.000000e+00> : vector<8x128xf32>
    %20 = tpu.matmul %15, %18, %cst_8 {dimension_numbers = #tpu.dot_dimension_numbers<[1], [0], [0], [1], [0, 0, 1, 1], [], []>} : vector<8x2048xbf16>, vector<2048x128xbf16>, vector<8x128xf32> -> vector<8x128xf32>
    %21 = arith.addf %19, %20 : vector<8x128xf32>
    %c0_9 = arith.constant 0 : index
    %c0_10 = arith.constant 0 : index
    %22 = vector.load %arg7[%c0_9, %c0_10] : memref<8x128xf32, #tpu.memory_space<vmem>>, vector<8x128xf32>
    tpu.vector_store %arg7[%c0_9, %c0_10], %21 {strides = array<i32>} : memref<8x128xf32, #tpu.memory_space<vmem>>, vector<8x128xf32>,
    %c0_11 = arith.constant 0 : index
    %c0_12 = arith.constant 0 : index
    %23 = vector.load %arg8[%c0_11, %c0_12] : memref<8x1xf32, #tpu.memory_space<vmem>>, vector<8x1xf32>
    %24 = arith.extf %3 : vector<8x256xbf16> to vector<8x256xf32>
    %cst_13 = arith.constant dense<0.000000e+00> : vector<8xf32>
    %25 = vector.multi_reduction <add>, %24, %cst_13 [1] : vector<8x256xf32> to vector<8xf32>
    %26 = vector.shape_cast %25 : vector<8xf32> to vector<8x1xf32>
    %27 = arith.addf %23, %26 : vector<8x1xf32>
    %c0_14 = arith.constant 0 : index
    %c0_15 = arith.constant 0 : index
    %28 = vector.load %arg8[%c0_14, %c0_15] : memref<8x1xf32, #tpu.memory_space<vmem>>, vector<8x1xf32>
    tpu.vector_store %arg8[%c0_14, %c0_15], %27 {strides = array<i32>} : memref<8x1xf32, #tpu.memory_space<vmem>>, vector<8x1xf32>,
    %c0_i32_16 = arith.constant 0 : i32
    %29 = arith.cmpi eq, %arg1, %c0_i32_16 : i32
    %30 = arith.extui %29 : i1 to i32
    %c0_i32_17 = arith.constant 0 : i32
    %31 = arith.cmpi ne, %30, %c0_i32_17 : i32
    scf.if %31 {
      %c0_18 = arith.constant 0 : index
      %c0_19 = arith.constant 0 : index
      %32 = vector.load %arg7[%c0_18, %c0_19] : memref<8x128xf32, #tpu.memory_space<vmem>>, vector<8x128xf32>
      %c0_20 = arith.constant 0 : index
      %c0_21 = arith.constant 0 : index
      %33 = vector.load %arg8[%c0_20, %c0_21] : memref<8x1xf32, #tpu.memory_space<vmem>>, vector<8x1xf32>
      %34 = arith.mulf %32, %32 : vector<8x128xf32>
      %cst_22 = arith.constant dense<0.000000e+00> : vector<8xf32>
      %35 = vector.multi_reduction <add>, %34, %cst_22 [1] : vector<8x128xf32> to vector<8xf32>
      %36 = vector.shape_cast %35 : vector<8xf32> to vector<8x1xf32>
      %cst_23 = arith.constant 9.99999996E-13 : f32
      %37 = vector.broadcast %cst_23 : f32 to vector<8x1xf32>
      %38 = arith.mulf %33, %37 : vector<8x1xf32>
      %39 = arith.mulf %38, %38 : vector<8x1xf32>
      %40 = arith.maximumf %36, %39 : vector<8x1xf32>
      %41 = math.rsqrt %40 : vector<8x1xf32>
      %42 = vector.broadcast %41 : vector<8x1xf32> to vector<8x128xf32>
      %43 = arith.mulf %32, %42 : vector<8x128xf32>
      %c0_24 = arith.constant 0 : index
      %c0_25 = arith.constant 0 : index
      %44 = vector.load %arg4[%c0_24, %c0_25] : memref<128x8xf32, #tpu.memory_space<vmem>>, vector<128x8xf32>
      %cst_26 = arith.constant dense<0.000000e+00> : vector<8x8xf32>
      %45 = tpu.matmul %43, %44, %cst_26 {dimension_numbers = #tpu.dot_dimension_numbers<[1], [0], [0], [1], [0, 0, 1, 1], [], []>} : vector<8x128xf32>, vector<128x8xf32>, vector<8x8xf32> -> vector<8x8xf32>
      %c0_27 = arith.constant 0 : index
      %c0_28 = arith.constant 0 : index
      %46 = vector.load %arg5[%c0_27, %c0_28] : memref<1x8xf32, #tpu.memory_space<vmem>>, vector<1x8xf32>
      %47 = vector.broadcast %46 : vector<1x8xf32> to vector<8x8xf32>
      %48 = arith.addf %45, %47 : vector<8x8xf32>
      %c0_29 = arith.constant 0 : index
      %c0_30 = arith.constant 0 : index
      %49 = vector.load %arg6[%c0_29, %c0_30] : memref<8x8xf32, #tpu.memory_space<vmem>>, vector<8x8xf32>
      tpu.vector_store %arg6[%c0_29, %c0_30], %48 {strides = array<i32>} : memref<8x8xf32, #tpu.memory_space<vmem>>, vector<8x8xf32>,
    } else {
    }
    return
  }
  func.func @transform_0(%arg0: i32, %arg1: i32) -> (i32, i32, i32) {
    %c0_i32 = arith.constant 0 : i32
    %c0_i32_0 = arith.constant 0 : i32
    return %arg0, %arg1, %c0_i32 : i32, i32, i32
  }
  func.func @transform_1(%arg0: i32, %arg1: i32) -> (i32, i32) {
    %c0_i32 = arith.constant 0 : i32
    return %arg0, %arg1 : i32, i32
  }
  func.func @transform_2(%arg0: i32, %arg1: i32) -> (i32, i32) {
    %c0_i32 = arith.constant 0 : i32
    %c0_i32_0 = arith.constant 0 : i32
    %c0_i32_1 = arith.constant 0 : i32
    return %c0_i32, %c0_i32_0 : i32, i32
  }
  func.func @transform_3(%arg0: i32, %arg1: i32) -> (i32, i32) {
    %c0_i32 = arith.constant 0 : i32
    %c0_i32_0 = arith.constant 0 : i32
    %c0_i32_1 = arith.constant 0 : i32
    return %c0_i32, %c0_i32_0 : i32, i32
  }
  func.func @transform_4(%arg0: i32, %arg1: i32) -> (i32, i32) {
    %c0_i32 = arith.constant 0 : i32
    %c0_i32_0 = arith.constant 0 : i32
    return %arg0, %c0_i32 : i32, i32
  }
}

</mosaic_0001>

<bundles_post_ra>
// kernel: tpu_custom_call.1
= control target key start
LH: loop header
LB: loop body
LE: loop exit
PB: predicated region body
PF: predicated region fallthrough
CT: control target
= control target key end

     0   :  { %s2692_s0 = inlined_call_operand.hbm [shape: f32[16,256,128], index: 0, kind: input, shape index: {}]   ;;  %s2693_s1 = inlined_call_operand.hbm [shape: bf16[16,256], index: 1, kind: input, shape index: {}]   ;;  %s2694_s2 = inlined_call_operand.vmem [shape: f32[128,8], index: 2, kind: input, shape index: {}]   ;;  %s2695_s3 = inlined_call_operand.hbm [shape: f32[1,8], index: 3, kind: input, shape index: {}]   ;;  %s2696_s4 = inlined_call_operand.vmem [shape: f32[16,8], index: 4, kind: output, shape index: {}]  }
   0x1   :  { %2703 = sst [smem:[#allocation12_spill]] %s2692_s0 }
   0x2   :  { %9 = vsyncpa [#allocation5], 0 }
   0x3   :  { %11 = vsyncpa [#allocation5 + $0x1], 0 }
   0x4   :  { %12 = vsyncpa [#allocation7], 0 }
   0x5   :  { %14 = vsyncpa [#allocation7 + $0x1], 0  ;;  %s1889_s15 = smov 0   ;;  %s1891_s16 = smov 0  }
   0x6   :  { %s1893_s17 = smov 0   ;;  %s1895_s18 = smov 0  }
   0x7   :  { %s1897_s19 = smov 0   ;;  %s1899_s20 = smov 0  }
   0x8 LB: > { %s2702_s21 = sadd.s32 4294967295, %s1853_s20   ;;  %s41_s22 = sadd.s32 1, %s1841_s17  ;;  %s1853_s20 = sphi %s1899_s20, %s20_s20   ;;  %s1849_s19 = sphi %s1897_s19, %s2747_s19   ;;  %s1845_s18 = sphi %s1895_s18, %s2746_s18   ;;  %s1841_s17 = sphi %s1893_s17, %s2745_s17   ;;  %s1837_s16 = sphi %s1891_s16, %s2744_s16   ;;  %s1833_s15 = sphi %s1889_s15, %s2743_s15  }
   0x9   : > { %p48_p0 = scmp.ne.s32.totalorder %s1841_s17, %s1837_s16  ;;  %p49_p1 = scmp.eq.s32.totalorder %s1853_s20, 0 }
   0xa   : > { %p54_p2 = scmp.ne.s32.totalorder %s1837_s16, %s1833_s15  ;;  %p1925_p3 = scmp.eq.s32.totalorder %s2702_s21, 0 }
   0xb   : > { %p50_p4 = por %p49_p1, %p48_p0  ;;  %p1349_p5 = scmp.ge.s32.totalorder %s1853_s20, 1 }
   0xc   : > { %s2704_s23 = scalar_select %p1925_p3, 1, 0 }
   0xd   : > { %p1932_p6 = por %p1925_p3, %p54_p2  ;;  %p161_p7 = scmp.lt.s32.totalorder %s1853_s20, 3 }
   0xe   : > { %s1855_s26 = smov [#allocation8]   ;;  %p1644_p10 = scmp.lt.s32.totalorder %s1853_s20, 2 }
   0xf   : > { %s2705_s24 = scalar_select %p1932_p6, 1, 0 }
  0x10   : > { %p1937_p8 = pnand %p1349_p5, %p161_p7  ;;  %s177_s27 = sshll.u32 %s1855_s26, 4  ;;  %s178_s27 = int_to_ptr.vmem [resolvable:$true] %s177_s27 }
  0x11   : > { %s1945_s28 = sand.u32 1, %s1841_s17   ;;  %p1953_p12 = pnand %p1644_p10, %p50_p4 }
  0x12   : > { %s2706_s25 = scalar_select %p1937_p8, 1, 0 }
  0x13   : > { %p1632_p9 = pneg %p1937_p8  ;;  %s1707_s7 = scalar_lea.hbm %s2695_s3, 16 }
  0x14   : > { %s2708_s30 = scalar_select %p1953_p12, 1, 0 }
  0x15   : > { %p1949_p11 = pnand %p1632_p9, %p1925_p3  ;;  %p1708_p13 = scmp.ne.s32.totalorder %s2695_s3, %s1707_s7 }
  0x16   : > { %p1714_p5 = scmp.lt.u32.totalorder %s1707_s7, %s2695_s3 }
  0x17   : > { %p1709_p0 = pneg %p1949_p11 }
  0x19   : > { %p1710_p1 = pnand %p1709_p0, %p1708_p13 }
  0x1b   : > { %p1711_p2 = pneg %p1710_p1 }
  0x1d   : > { %p1716_p4 = pnand %p1714_p5, %p1711_p2 }
  0x1f   : > { %1719 = shalt.err (!%p1716_p4)
}
  0x20   : > { %s1720_s12 = scalar_lea.vmem %s178_s27, 16  ;;  %s1727_s13 = scalar_lea.vmem %s178_s27, 32 }
  0x21   : > { %p1721_p7 = scmp.ne.s32.totalorder %s178_s27, %s1720_s12  ;;  %p1728_p3 = scmp.lt.s32.totalorder %s178_s27, %s178_s27 }
  0x22   : > { %p1729_p6 = scmp.lt.s32.totalorder %s1727_s13, %s1720_s12 }
  0x23   : > { %p1723_p9 = pnand %p1721_p7, %p1709_p0 }
  0x24   : > { %p1730_p8 = por %p1729_p6, %p1728_p3 }
  0x25   : > { %p1724_p10 = pneg %p1723_p9 }
  0x27   : > { %p1731_p12 = pnand %p1730_p8, %p1724_p10 }
  0x29   : > { %1734 = shalt.err (!%p1731_p12)
}
  0x2a   : > { %1635 = dma.hbm_to_vmem [thread:$0]  (!%p1949_p11), %s2695_s3, 16, %s178_s27, [#allocation7]  }
  0x2b   : > { %s32_s26 = sadd.s32 1, %s1849_s19  ;;  %s1352_s5 = sshll.u32 %s1945_s28, 11 }
  0x2c   : > { %p34_p13 = scmp.ge.s32.totalorder %s32_s26, 2  ;;  %s1370_s6 = sshll.u32 %s1849_s19, 15 }
  0x2d   : > { %s192_s7 = scalar_lea.vmem [#allocation4], %s1352_s5  ;;  %s2709_s0 = sld [smem:[#allocation12_spill]] }
  0x2e   : > { %s202_s8 = sshll.u32 %s192_s7, 4  ;;  %s2749_s26 = smov (%p34_p13, %s32_s26), 0  ;;  %s1983_s8 = int_to_ptr.vmem [resolvable:$true] %s202_s8 }
  0x2f   : > { %s36_s27 = ssub.s32 %s1849_s19, %s2749_s26  ;;  %s189_s12 = scalar_lea.sflag [#allocation5], %s1945_s28 }
  0x30   : > { %p1987_p3 = scmp.eq.s32.totalorder %s36_s27, 0  ;;  %p2711_p8 = scmp.ne.s32.totalorder %s2708_s30, 0 }
  0x32   : > { %p1737_p11 = pneg %p2711_p8 }
  0x33   : > { %s1981_s10 = scalar_lea.hbm %s2709_s0, %s1370_s6  ;;  %s1740_s5 = scalar_lea.hbm %s2709_s0, 65536 }
  0x34   : > { %s1735_s13 = scalar_lea.hbm %s1981_s10, 32768  ;;  %p1741_p1 = scmp.lt.u32.totalorder %s1981_s10, %s2709_s0 }
  0x35   : > { %p1736_p6 = scmp.ne.s32.totalorder %s1981_s10, %s1735_s13  ;;  %p1742_p2 = scmp.lt.u32.totalorder %s1740_s5, %s1735_s13 }
  0x36   : > { %p1744_p4 = scmp.lt.u32.totalorder %s1735_s13, %s1981_s10 }
  0x37   : > { %p1738_p12 = pnand %p1737_p11, %p1736_p6  ;;  %p1743_p5 = por %p1742_p2, %p1741_p1 }
  0x39   : > { %p1739_p0 = pneg %p1738_p12  ;;  %p1745_p7 = por %p1744_p4, %p1743_p5 }
  0x3b   : > { %p1746_p9 = pnand %p1745_p7, %p1739_p0 }
  0x3d   : > { %1749 = shalt.err (!%p1746_p9)
}
  0x3e   : > { %s1750_s29 = scalar_lea.vmem %s1983_s8, 32768  ;;  %s1856_s9 = smov [#allocation4]  }
  0x3f   : > { %p1751_p10 = scmp.ne.s32.totalorder %s1983_s8, %s1750_s29  ;;  %s1755_s27 = sshll.u32 %s1856_s9, 4  ;;  %s1756_s27 = int_to_ptr.vmem [resolvable:$false] %s1755_s27 }
  0x40   : > { %s1757_s14 = scalar_lea.vmem %s1756_s27, 65536  ;;  %p1758_p12 = scmp.lt.s32.totalorder %s1983_s8, %s1756_s27 }
  0x41   : > { %p1753_p13 = pnand %p1751_p10, %p1737_p11  ;;  %p1759_p1 = scmp.lt.s32.totalorder %s1757_s14, %s1750_s29 }
  0x43   : > { %p1754_p6 = pneg %p1753_p13  ;;  %p1760_p2 = por %p1759_p1, %p1758_p12 }
  0x45   : > { %p1761_p5 = pnand %p1760_p2, %p1754_p6 }
  0x47   : > { %1764 = shalt.err (!%p1761_p5)
}
  0x48   : > { %s1857_s13 = smov 128   ;;  %s1858_s15 = smov 8  }
  0x49   : > { %1639 = dma.hbm_to_vmem [thread:$0]  (!%p2711_p8), %s1981_s10, 32768, %s1983_s8, %s189_s12, %s1857_s13, %s1857_s13, %s1858_s15  }
  0x4a   : > { %s2024_s5 = scalar_select %p1987_p3, %s1841_s17, %s41_s22  }
  0x4b   : > { %s212_s6 = sand.u32 1, %s1853_s20   ;;  %s1356_s7 = sshll.u32 %s1945_s28, 3 }
  0x4c   : > { %s1371_s29 = sshll.u32 %s1849_s19, 7  ;;  %s216_s9 = scalar_lea.vmem [#allocation6], %s1356_s7 }
  0x4d   : > { %s226_s27 = sshll.u32 %s216_s9, 4  ;;  %s2032_s0 = scalar_lea.hbm %s2693_s1, %s1371_s29  ;;  %s227_s27 = int_to_ptr.vmem [resolvable:$true] %s226_s27 }
  0x4e   : > { %s213_s8 = scalar_lea.sflag [#allocation7], %s212_s6  ;;  %s1765_s10 = scalar_lea.hbm %s2032_s0, 128 }
  0x4f   : > { %p1766_p0 = scmp.ne.s32.totalorder %s2032_s0, %s1765_s10  ;;  %s1770_s11 = scalar_lea.hbm %s2693_s1, 256 }
  0x50   : > { %p1771_p7 = scmp.lt.u32.totalorder %s2032_s0, %s2693_s1  ;;  %p1772_p9 = scmp.lt.u32.totalorder %s1770_s11, %s1765_s10 }
  0x51   : > { %p1768_p3 = pnand %p1766_p0, %p1737_p11  ;;  %p1774_p13 = scmp.lt.u32.totalorder %s1765_s10, %s2032_s0 }
  0x52   : > { %p1773_p10 = por %p1772_p9, %p1771_p7 }
  0x53   : > { %p1769_p4 = pneg %p1768_p3 }
  0x54   : > { %p1775_p6 = por %p1774_p13, %p1773_p10 }
  0x56   : > { %p1776_p12 = pnand %p1775_p6, %p1769_p4 }
  0x58   : > { %1779 = shalt.err (!%p1776_p12)
}
  0x59   : > { %s1780_s13 = scalar_lea.vmem %s227_s27, 128  ;;  %s1859_s15 = smov [#allocation6]  }
  0x5a   : > { %p1781_p1 = scmp.ne.s32.totalorder %s227_s27, %s1780_s13  ;;  %s1785_s6 = sshll.u32 %s1859_s15, 4  ;;  %s1786_s6 = int_to_ptr.vmem [resolvable:$false] %s1785_s6 }
  0x5b   : > { %s1787_s7 = scalar_lea.vmem %s1786_s6, 256  ;;  %p1788_p0 = scmp.lt.s32.totalorder %s227_s27, %s1786_s6 }
  0x5c   : > { %p1783_p2 = pnand %p1781_p1, %p1737_p11  ;;  %p1789_p3 = scmp.lt.s32.totalorder %s1787_s7, %s1780_s13 }
  0x5e   : > { %p1784_p5 = pneg %p1783_p2  ;;  %p1790_p7 = por %p1789_p3, %p1788_p0 }
  0x60   : > { %p1791_p9 = pnand %p1790_p7, %p1784_p5 }
  0x62   : > { %1794 = shalt.err (!%p1791_p9)
}
  0x63   : > { %1642 = dma.hbm_to_vmem [thread:$0]  (!%p2711_p8), %s2032_s0, 128, %s227_s27, %s213_s8  }
  0x64   : > { %p2712_p4 = scmp.ne.s32.totalorder %s2706_s25, 0 }
  0x65   : > { %s237_s29 = sand.u32 (!%p2712_p4), 1, %s1837_s16   ;;  %p2713_p11 = scmp.ne.s32.totalorder (!%p2712_p4), %s2705_s24, 0 }
  0x66   : > { %235 = sbr.rel (%p2712_p4) target bundleno = 970 (0x3ca), region = 36  ;;  %s1360_s9 = sshll.u32 (!%p2712_p4), %s237_s29, 11 }
  0x67   : > { %s238_s14 = scalar_lea.sflag (!%p2712_p4), [#allocation5], %s237_s29  ;;  %s2056_s10 = scalar_lea.vmem (!%p2712_p4), [#allocation4], %s1360_s9 }
  0x6d   : > { %1820 = dma.done.wait (%p2713_p11), %s238_s14, 32768  }
  0x6e   : > { %1822 = vsyncadd (%p2713_p11), %s238_s14, 4294934528  ;;  %s2714_s22 = sadd.s32 4294967295, %s1853_s20   ;;  %s1361_s0 = sshll.u32 %s237_s29, 3 }
  0x6f   : > { %s246_s30 = sand.u32 1, %s2714_s22   ;;  %s2064_s25 = scalar_lea.vmem [#allocation6], %s1361_s0 }
  0x70   : > { %s247_s27 = scalar_lea.sflag [#allocation7], %s246_s30 }
  0x71   : > { %1824 = dma.done.wait (%p2713_p11), %s247_s27, 128  }
  0x72   : > { %1826 = vsyncadd (%p2713_p11), %s247_s27, 4294967168  ;;  %p2715_p8 = scmp.ne.s32.totalorder %s2704_s23, 0 }
  0x74   : > { %1828 = dma.done.wait (%p2715_p8), [#allocation7], 16  }
  0x75   : > { %1830 = vsyncadd (%p2715_p8), [#allocation7], 4294967280  ;;  %v306_v0 = vlaneseq  ;;  %v423_v2 = vld [vmem:[%s2056_s10 + $0x80] sm:$0xff]  ;;  %v424_v3 = vld [vmem:[%s2056_s10 + $0x88] sm:$0xff]  ;;  %p286_p10 = scmp.lt.s32.totalorder %s1845_s18, 1 }
  0x76   : > { %v455_v4 = vld [vmem:[%s2056_s10 + $0x180] sm:$0xff]  ;;  %v671_v5 = vpack.c.bf16 %v424_v3, %v423_v2  ;;  %v456_v6 = vld [vmem:[%s2056_s10 + $0x188] sm:$0xff]  ;;  %v425_v13 = vld [vmem:[%s2056_s10 + $0x90] sm:$0xff] }
  0x77   : > { %v307_v1 = vshrl.u32 %v306_v0, 7  ;;  %v407_v7 = vld [vmem:[%s2056_s10] sm:$0xff]  ;;  %v408_v8 = vld [vmem:[%s2056_s10 + $0x8] sm:$0xff]  ;;  %v687_v9 = vpack.c.bf16 %v456_v6, %v455_v4  ;;  %v426_v16 = vld [vmem:[%s2056_s10 + $0x98] sm:$0xff]  ;;  %v2088_v19 = vand.u32 127, %v306_v0  ;;  %s2751_s18 = smov (!%p286_p10, %s1845_s18), 1 }
  0x78   : > { %v663_v10 = vpack.c.bf16 %v408_v8, %v407_v7  ;;  %v439_v11 = vld [vmem:[%s2056_s10 + $0x100] sm:$0xff]  ;;  %v440_v12 = vld [vmem:[%s2056_s10 + $0x108] sm:$0xff]  ;;  %1372 = vmatprep.subr.bf16.mxu0 %v671_v5  ;;  %v457_v17 = vld [vmem:[%s2056_s10 + $0x190] sm:$0xff]  ;;  %v672_v20 = vpack.c.bf16 %v426_v16, %v425_v13  ;;  %s1363_s9 = sshll.u32 %s2751_s18, 3 }
  0x79   : > { %v2083_v14 = vmul.u32 256, %v307_v1  ;;  %v679_v15 = vpack.c.bf16 %v440_v12, %v439_v11  ;;  %v458_v18 = vld [vmem:[%s2056_s10 + $0x198] sm:$0xff]  ;;  %1394 = vmatprep.subr.bf16.mxu1 %v687_v9  ;;  %v409_v22 = vld [vmem:[%s2056_s10 + $0x10] sm:$0xff]  ;;  %v427_v27 = vld [vmem:[%s2056_s10 + $0xa0] sm:$0xff]  ;;  %v2097_v29 = vadd.s32 1024, %v2088_v19  ;;  %v2100_v30 = vadd.s32 1280, %v2088_v19  ;;  %s289_s22 = scalar_lea.vmem %s2696_s4, %s1363_s9 }
  0x7a   : > { %1373 = vmatpush3.bf16.msra.mxu0 %v663_v10  ;;  %v688_v21 = vpack.c.bf16 %v458_v18, %v457_v17  ;;  %v410_v23 = vld [vmem:[%s2056_s10 + $0x18] sm:$0xff]  ;;  %v441_v24 = vld [vmem:[%s2056_s10 + $0x110] sm:$0xff]  ;;  %v428_v28 = vld [vmem:[%s2056_s10 + $0xa8] sm:$0xff]  ;;  %v2109_v37 = vadd.s32 1664, %v2088_v19  ;;  %v2129_v51 = vadd.s32 1920, %v2088_v19  ;;  %v2146_v59 = vadd.s32 1536, %v2088_v19 }
  0x7b   : > { %1395 = vmatpush3.bf16.msra.mxu1 %v679_v15  ;;  %v664_v25 = vpack.c.bf16 %v410_v23, %v409_v22  ;;  %v442_v26 = vld [vmem:[%s2056_s10 + $0x118] sm:$0xff]  ;;  %1374 = vmatprep.subr.bf16.mxu0 %v672_v20  ;;  %v673_v32 = vpack.c.bf16 %v428_v28, %v427_v27  ;;  %v459_v33 = vld [vmem:[%s2056_s10 + $0x1a0] sm:$0xff]  ;;  %v460_v34 = vld [vmem:[%s2056_s10 + $0x1a8] sm:$0xff]  ;;  %v2106_v36 = vadd.s32 256, %v2083_v14  ;;  %vm334_vm0 = vcmp.ge.s32.totalorder %v2097_v29, %v2083_v14 }
  0x7c   : > { %1396 = vmatprep.subr.bf16.mxu1 %v688_v21  ;;  %v680_v31 = vpack.c.bf16 %v442_v26, %v441_v24  ;;  %v411_v35 = vld [vmem:[%s2056_s10 + $0x20] sm:$0xff]  ;;  %v689_v38 = vpack.c.bf16 %v460_v34, %v459_v33  ;;  %v412_v39 = vld [vmem:[%s2056_s10 + $0x28] sm:$0xff]  ;;  %v429_v44 = vld [vmem:[%s2056_s10 + $0xb0] sm:$0xff]  ;;  %vm336_vm2 = vcmp.ge.s32.totalorder %v2100_v30, %v2083_v14  ;;  %vm339_vm4 = vcmp.ge.s32.totalorder %v2109_v37, %v2083_v14 }
  0x7d   : > { %v443_v40 = vld [vmem:[%s2056_s10 + $0x120] sm:$0xff]  ;;  %v444_v41 = vld [vmem:[%s2056_s10 + $0x128] sm:$0xff]  ;;  %v665_v42 = vpack.c.bf16 %v412_v39, %v411_v35  ;;  %v430_v45 = vld [vmem:[%s2056_s10 + $0xb8] sm:$0xff]  ;;  %vm351_vm1 = vcmp.lt.s32.totalorder %v2097_v29, %v2106_v36  ;;  %vm353_vm3 = vcmp.lt.s32.totalorder %v2100_v30, %v2106_v36  ;;  %vm356_vm5 = vcmp.lt.s32.totalorder %v2109_v37, %v2106_v36 }
  0x7e   : > { %1375 = vmatpush3.bf16.msra.mxu0 %v664_v25  ;;  %v681_v43 = vpack.c.bf16 %v444_v41, %v443_v40  ;;  %v461_v46 = vld [vmem:[%s2056_s10 + $0x1b0] sm:$0xff]  ;;  %v674_v47 = vpack.c.bf16 %v430_v45, %v429_v44  ;;  %v462_v48 = vld [vmem:[%s2056_s10 + $0x1b8] sm:$0xff]  ;;  %v431_v55 = vld [vmem:[%s2056_s10 + $0xc0] sm:$0xff]  ;;  %vm341_vm6 = vcmp.ge.s32.totalorder %v2129_v51, %v2083_v14  ;;  %vm358_vm7 = vcmp.lt.s32.totalorder %v2129_v51, %v2106_v36 }
  0x7f   : > { %1397 = vmatpush3.bf16.msra.mxu1 %v680_v31  ;;  %1376 = vmatprep.subr.bf16.mxu0 %v673_v32  ;;  %v413_v49 = vld [vmem:[%s2056_s10 + $0x30] sm:$0xff]  ;;  %v414_v50 = vld [vmem:[%s2056_s10 + $0x38] sm:$0xff]  ;;  %v690_v52 = vpack.c.bf16 %v462_v48, %v461_v46  ;;  %v432_v56 = vld [vmem:[%s2056_s10 + $0xc8] sm:$0xff]  ;;  %v2149_v62 = vadd.s32 1792, %v2088_v19  ;;  %vm355_vm9 = vcmp.lt.s32.totalorder %v2146_v59, %v2106_v36  ;;  %v310_v7 = vadd.s32 128, %v2088_v19 }
  0x80   : > { %1398 = vmatprep.subr.bf16.mxu1 %v689_v38  ;;  %v445_v53 = vld [vmem:[%s2056_s10 + $0x130] sm:$0xff]  ;;  %v446_v54 = vld [vmem:[%s2056_s10 + $0x138] sm:$0xff]  ;;  %v463_v57 = vld [vmem:[%s2056_s10 + $0x1c0] sm:$0xff]  ;;  %v666_v60 = vpack.c.bf16 %v414_v50, %v413_v49  ;;  %v675_v63 = vpack.c.bf16 %v432_v56, %v431_v55  ;;  %v312_v11 = vadd.s32 384, %v2088_v19  ;;  %v311_v31 = vadd.s32 256, %v2088_v19 }
  0x81   : > { %v464_v58 = vld [vmem:[%s2056_s10 + $0x1c8] sm:$0xff]  ;;  %v682_v61 = vpack.c.bf16 %v446_v54, %v445_v53  ;;  %v415_v0 = vld [vmem:[%s2056_s10 + $0x40] sm:$0xff]  ;;  %v433_v5 = vld [vmem:[%s2056_s10 + $0xd0] sm:$0xff]  ;;  %vm327_vm12 = vcmp.ge.s32.totalorder %v310_v7, %v2083_v14  ;;  %vm344_vm13 = vcmp.lt.s32.totalorder %v310_v7, %v2106_v36  ;;  %vm343_vm8 = vcmp.lt.s32.totalorder %v2088_v19, %v2106_v36 }
  0x82   : > { %1377 = vmatpush3.bf16.msra.mxu0 %v665_v42  ;;  %v416_v1 = vld [vmem:[%s2056_s10 + $0x48] sm:$0xff]  ;;  %v447_v2 = vld [vmem:[%s2056_s10 + $0x140] sm:$0xff]  ;;  %v691_v3 = vpack.c.bf16 %v464_v58, %v463_v57  ;;  %v434_v6 = vld [vmem:[%s2056_s10 + $0xd8] sm:$0xff]  ;;  %vm329_vm14 = vcmp.ge.s32.totalorder %v312_v11, %v2083_v14  ;;  %vm346_vm15 = vcmp.lt.s32.totalorder %v312_v11, %v2106_v36 }
  0x83   : > { %1399 = vmatpush3.bf16.msra.mxu1 %v681_v43  ;;  %1378 = vmatprep.subr.bf16.mxu0 %v674_v47  ;;  %v448_v4 = vld [vmem:[%s2056_s10 + $0x148] sm:$0xff]  ;;  %v465_v8 = vld [vmem:[%s2056_s10 + $0x1d0] sm:$0xff]  ;;  %v466_v9 = vld [vmem:[%s2056_s10 + $0x1d8] sm:$0xff]  ;;  %v667_v10 = vpack.c.bf16 %v416_v1, %v415_v0  ;;  %v676_v13 = vpack.c.bf16 %v434_v6, %v433_v5 }
  0x84   : > { %1400 = vmatprep.subr.bf16.mxu1 %v690_v52  ;;  %v683_v12 = vpack.c.bf16 %v448_v4, %v447_v2  ;;  %v417_v15 = vld [vmem:[%s2056_s10 + $0x50] sm:$0xff]  ;;  %v418_v16 = vld [vmem:[%s2056_s10 + $0x58] sm:$0xff]  ;;  %v692_v18 = vpack.c.bf16 %v466_v9, %v465_v8  ;;  %v435_v21 = vld [vmem:[%s2056_s10 + $0xe0] sm:$0xff] }
  0x85   : > { %v449_v17 = vld [vmem:[%s2056_s10 + $0x150] sm:$0xff]  ;;  %v450_v20 = vld [vmem:[%s2056_s10 + $0x158] sm:$0xff]  ;;  %v436_v22 = vld [vmem:[%s2056_s10 + $0xe8] sm:$0xff]  ;;  %v668_v25 = vpack.c.bf16 %v418_v16, %v417_v15 }
  0x86   : > { %1379 = vmatpush3.bf16.msra.mxu0 %v666_v60  ;;  %v467_v23 = vld [vmem:[%s2056_s10 + $0x1e0] sm:$0xff]  ;;  %v468_v24 = vld [vmem:[%s2056_s10 + $0x1e8] sm:$0xff]  ;;  %v684_v32 = vpack.c.bf16 %v450_v20, %v449_v17  ;;  %v677_v33 = vpack.c.bf16 %v436_v22, %v435_v21  ;;  %vm2193_vm10 = vmand %vm327_vm12, %vm344_vm13  ;;  %vm326_vm13 = vcmp.ge.s32.totalorder %v2088_v19, %v2083_v14 }
  0x87   : > { %1401 = vmatpush3.bf16.msra.mxu1 %v682_v61  ;;  %1380 = vmatprep.subr.bf16.mxu0 %v675_v63  ;;  %v419_v26 = vld [vmem:[%s2056_s10 + $0x60] sm:$0xff]  ;;  %v420_v27 = vld [vmem:[%s2056_s10 + $0x68] sm:$0xff]  ;;  %v693_v39 = vpack.c.bf16 %v468_v24, %v467_v23  ;;  %v437_v40 = vld [vmem:[%s2056_s10 + $0xf0] sm:$0xff] }
  0x88   : > { %1402 = vmatprep.subr.bf16.mxu1 %v691_v3  ;;  %v451_v28 = vld [vmem:[%s2056_s10 + $0x160] sm:$0xff]  ;;  %v452_v34 = vld [vmem:[%s2056_s10 + $0x168] sm:$0xff]  ;;  %v438_v41 = vld [vmem:[%s2056_s10 + $0xf8] sm:$0xff]  ;;  %v669_v46 = vpack.c.bf16 %v420_v27, %v419_v26 }
  0x89   : > { %v2187_v35 = vld [vmem:[%s2064_s25] sm:$0xff]  ;;  %vm376_vm11 = vmpackc.low %vm2193_vm10, %vm2193_vm10  ;;  %v469_v43 = vld [vmem:[%s2056_s10 + $0x1f0] sm:$0xff]  ;;  %v685_v49 = vpack.c.bf16 %v452_v34, %v451_v28  ;;  %v678_v50 = vpack.c.bf16 %v438_v41, %v437_v40 }
  0x8a   : > { %1381 = vmatpush3.bf16.msra.mxu0 %v667_v10  ;;  %v2201_v42 = vcombine.high %v2187_v35, %v2187_v35  ;;  %v470_v44 = vld [vmem:[%s2056_s10 + $0x1f8] sm:$0xff]  ;;  %vm2212_vm12 = vmand %vm329_vm14, %vm346_vm15  ;;  %v421_v47 = vld [vmem:[%s2056_s10 + $0x70] sm:$0xff]  ;;  %vm328_vm14 = vcmp.ge.s32.totalorder %v311_v31, %v2083_v14  ;;  %vm345_vm15 = vcmp.lt.s32.totalorder %v311_v31, %v2106_v36  ;;  %v2255_v2 = vcombine.low %v2187_v35, %v2187_v35 }
  0x8b   : > { %1403 = vmatpush3.bf16.msra.mxu1 %v683_v12  ;;  %1382 = vmatprep.subr.bf16.mxu0 %v676_v13  ;;  %vm378_vm10 = vmpackc.low %vm2212_vm12, %vm2212_vm12  ;;  %v422_v52 = vld [vmem:[%s2056_s10 + $0x78] sm:$0xff]  ;;  %v453_v53 = vld [vmem:[%s2056_s10 + $0x170] sm:$0xff]  ;;  %v694_v56 = vpack.c.bf16 %v470_v44, %v469_v43 }
  0x8c   : > { %1404 = vmatprep.subr.bf16.mxu1 %v692_v18  ;;  %v392_v48 = vsel %vm376_vm11, %v2201_v42, 0  ;;  %v454_v54 = vld [vmem:[%s2056_s10 + $0x178] sm:$0xff]  ;;  %v394_v55 = vsel %vm378_vm10, %v2201_v42, 0  ;;  %vm2237_vm11 = vmand %vm326_vm13, %vm343_vm8  ;;  %v487_v58 = vld [vmem:[%s2056_s10 + $0x280] sm:$0xff]  ;;  %v670_v1 = vpack.c.bf16 %v422_v52, %v421_v47 }
  0x8d   : > { %824 = vmatprep.mubr.bf16.mxu0 %v392_v48  ;;  %v488_v60 = vld [vmem:[%s2056_s10 + $0x288] sm:$0xff]  ;;  %864 = vmatprep.mubr.bf16.mxu1 %v394_v55  ;;  %vm2247_vm12 = vmand %vm328_vm14, %vm345_vm15  ;;  %v519_v63 = vld [vmem:[%s2056_s10 + $0x380] sm:$0xff]  ;;  %v686_v5 = vpack.c.bf16 %v454_v54, %v453_v53 }
  0x8e   : > { %1383 = vmatpush3.bf16.msra.mxu0 %v668_v25  ;;  %v520_v0 = vld [vmem:[%s2056_s10 + $0x388] sm:$0xff]  ;;  %v471_v3 = vld [vmem:[%s2056_s10 + $0x200] sm:$0xff]  ;;  %vm375_vm8 = vmpackc.low %vm2237_vm11, %vm2237_vm11  ;;  %v703_v6 = vpack.c.bf16 %v488_v60, %v487_v58 }
  0x8f   : > { %1405 = vmatpush3.bf16.msra.mxu1 %v684_v32  ;;  %1384 = vmatprep.subr.bf16.mxu0 %v677_v33  ;;  %v472_v4 = vld [vmem:[%s2056_s10 + $0x208] sm:$0xff]  ;;  %v503_v7 = vld [vmem:[%s2056_s10 + $0x300] sm:$0xff]  ;;  %vm377_vm13 = vmpackc.low %vm2247_vm12, %vm2247_vm12  ;;  %v719_v9 = vpack.c.bf16 %v520_v0, %v519_v63  ;;  %v391_v15 = vsel %vm375_vm8, %v2255_v2, 0 }
  0x90   : > { %1406 = vmatprep.subr.bf16.mxu1 %v693_v39  ;;  %v504_v8 = vld [vmem:[%s2056_s10 + $0x308] sm:$0xff]  ;;  %v489_v10 = vld [vmem:[%s2056_s10 + $0x290] sm:$0xff]  ;;  %v490_v11 = vld [vmem:[%s2056_s10 + $0x298] sm:$0xff]  ;;  %v695_v16 = vpack.c.bf16 %v472_v4, %v471_v3  ;;  %v393_v17 = vsel %vm377_vm13, %v2255_v2, 0 }
  0x91   : > { %v521_v12 = vld [vmem:[%s2056_s10 + $0x390] sm:$0xff]  ;;  %v522_v13 = vld [vmem:[%s2056_s10 + $0x398] sm:$0xff]  ;;  %v711_v18 = vpack.c.bf16 %v504_v8, %v503_v7  ;;  %v704_v20 = vpack.c.bf16 %v490_v11, %v489_v10  ;;  %v491_v26 = vld [vmem:[%s2056_s10 + $0x2a0] sm:$0xff] }
  0x92   : > { %1385 = vmatpush3.bf16.msra.mxu0 %v669_v46  ;;  %v473_v21 = vld [vmem:[%s2056_s10 + $0x210] sm:$0xff]  ;;  %v474_v22 = vld [vmem:[%s2056_s10 + $0x218] sm:$0xff]  ;;  %v720_v24 = vpack.c.bf16 %v522_v13, %v521_v12  ;;  %v492_v27 = vld [vmem:[%s2056_s10 + $0x2a8] sm:$0xff]  ;;  %v314_v46 = vadd.s32 640, %v2088_v19 }
  0x93   : > { %1407 = vmatpush3.bf16.msra.mxu1 %v685_v49  ;;  %1386 = vmatprep.subr.bf16.mxu0 %v678_v50  ;;  %v505_v23 = vld [vmem:[%s2056_s10 + $0x310] sm:$0xff]  ;;  %v506_v25 = vld [vmem:[%s2056_s10 + $0x318] sm:$0xff]  ;;  %v523_v28 = vld [vmem:[%s2056_s10 + $0x3a0] sm:$0xff]  ;;  %v696_v32 = vpack.c.bf16 %v474_v22, %v473_v21  ;;  %v705_v34 = vpack.c.bf16 %v492_v27, %v491_v26  ;;  %v316_v50 = vadd.s32 896, %v2088_v19 }
  0x94   : > { %1408 = vmatprep.subr.bf16.mxu1 %v694_v56  ;;  %v524_v31 = vld [vmem:[%s2056_s10 + $0x3a8] sm:$0xff]  ;;  %v712_v33 = vpack.c.bf16 %v506_v25, %v505_v23  ;;  %v475_v38 = vld [vmem:[%s2056_s10 + $0x220] sm:$0xff]  ;;  %v493_v44 = vld [vmem:[%s2056_s10 + $0x2b0] sm:$0xff]  ;;  %vm331_vm10 = vcmp.ge.s32.totalorder %v314_v46, %v2083_v14  ;;  %vm348_vm14 = vcmp.lt.s32.totalorder %v314_v46, %v2106_v36 }
  0x95   : > { %v476_v39 = vld [vmem:[%s2056_s10 + $0x228] sm:$0xff]  ;;  %v507_v40 = vld [vmem:[%s2056_s10 + $0x320] sm:$0xff]  ;;  %v721_v41 = vpack.c.bf16 %v524_v31, %v523_v28  ;;  %v494_v45 = vld [vmem:[%s2056_s10 + $0x2b8] sm:$0xff]  ;;  %vm333_vm15 = vcmp.ge.s32.totalorder %v316_v50, %v2083_v14  ;;  %vm350_vm11 = vcmp.lt.s32.totalorder %v316_v50, %v2106_v36 }
  0x96   : > { %1387 = vmatpush3.bf16.msra.mxu0 %v670_v1  ;;  %v508_v43 = vld [vmem:[%s2056_s10 + $0x328] sm:$0xff]  ;;  %v525_v47 = vld [vmem:[%s2056_s10 + $0x3b0] sm:$0xff]  ;;  %v526_v48 = vld [vmem:[%s2056_s10 + $0x3b8] sm:$0xff]  ;;  %v697_v49 = vpack.c.bf16 %v476_v39, %v475_v38  ;;  %v706_v53 = vpack.c.bf16 %v494_v45, %v493_v44 }
  0x97   : > { %1409 = vmatpush3.bf16.msra.mxu1 %v686_v5  ;;  %1416 = vmatprep.subr.bf16.mxu0 %v703_v6  ;;  %v713_v52 = vpack.c.bf16 %v508_v43, %v507_v40  ;;  %v477_v54 = vld [vmem:[%s2056_s10 + $0x230] sm:$0xff]  ;;  %v478_v55 = vld [vmem:[%s2056_s10 + $0x238] sm:$0xff]  ;;  %v722_v57 = vpack.c.bf16 %v526_v48, %v525_v47  ;;  %v495_v60 = vld [vmem:[%s2056_s10 + $0x2c0] sm:$0xff] }
  0x98   : > { %1438 = vmatprep.subr.bf16.mxu1 %v719_v9  ;;  %v509_v56 = vld [vmem:[%s2056_s10 + $0x330] sm:$0xff]  ;;  %v510_v58 = vld [vmem:[%s2056_s10 + $0x338] sm:$0xff]  ;;  %v496_v61 = vld [vmem:[%s2056_s10 + $0x2c8] sm:$0xff]  ;;  %v698_v1 = vpack.c.bf16 %v478_v55, %v477_v54 }
  0x99   : > { %825 = vmatmul.mubr.bf16.vlgmr.msra.gmra.mrb[0].mxu0 %v391_v15  ;;  %v527_v63 = vld [vmem:[%s2056_s10 + $0x3c0] sm:$0xff]  ;;  %v528_v0 = vld [vmem:[%s2056_s10 + $0x3c8] sm:$0xff]  ;;  %v714_v5 = vpack.c.bf16 %v510_v58, %v509_v56  ;;  %v707_v6 = vpack.c.bf16 %v496_v61, %v495_v60  ;;  %vm364_vm12 = vmand %vm331_vm10, %vm348_vm14 }
  0x9a   : > { %865 = vmatmul.mubr.bf16.vlgmr.msra.gmra.mrb[0].mxu1 %v393_v17  ;;  %1417 = vmatpush3.bf16.msra.mxu0 %v695_v16  ;;  %v479_v3 = vld [vmem:[%s2056_s10 + $0x240] sm:$0xff]  ;;  %v480_v4 = vld [vmem:[%s2056_s10 + $0x248] sm:$0xff]  ;;  %v723_v9 = vpack.c.bf16 %v528_v0, %v527_v63  ;;  %v497_v10 = vld [vmem:[%s2056_s10 + $0x2d0] sm:$0xff] }
  0x9b   : > { %1439 = vmatpush3.bf16.msra.mxu1 %v711_v18  ;;  %1418 = vmatprep.subr.bf16.mxu0 %v704_v20  ;;  %v511_v7 = vld [vmem:[%s2056_s10 + $0x340] sm:$0xff]  ;;  %v512_v8 = vld [vmem:[%s2056_s10 + $0x348] sm:$0xff]  ;;  %v498_v11 = vld [vmem:[%s2056_s10 + $0x2d8] sm:$0xff]  ;;  %v699_v16 = vpack.c.bf16 %v480_v4, %v479_v3 }
  0x9c   : > { %1440 = vmatprep.subr.bf16.mxu1 %v720_v24  ;;  %vm380_vm8 = vmpackc.low %vm364_vm12, %vm364_vm12  ;;  %v529_v12 = vld [vmem:[%s2056_s10 + $0x3d0] sm:$0xff]  ;;  %v530_v13 = vld [vmem:[%s2056_s10 + $0x3d8] sm:$0xff]  ;;  %v715_v17 = vpack.c.bf16 %v512_v8, %v511_v7  ;;  %v708_v18 = vpack.c.bf16 %v498_v11, %v497_v10 }
  0x9d   : > { %v396_v15 = vsel %vm380_vm8, %v2201_v42, 0  ;;  %vm366_vm13 = vmand %vm333_vm15, %vm350_vm11  ;;  %v481_v20 = vld [vmem:[%s2056_s10 + $0x250] sm:$0xff]  ;;  %v482_v21 = vld [vmem:[%s2056_s10 + $0x258] sm:$0xff]  ;;  %v724_v24 = vpack.c.bf16 %v530_v13, %v529_v12 }
  0x9e   : > { %1419 = vmatpush3.bf16.msra.mxu0 %v696_v32  ;;  %904 = vmatprep.mubr.bf16.mxu0 %v396_v15  ;;  %vm382_vm10 = vmpackc.low %vm366_vm13, %vm366_vm13  ;;  %v513_v22 = vld [vmem:[%s2056_s10 + $0x350] sm:$0xff]  ;;  %v514_v25 = vld [vmem:[%s2056_s10 + $0x358] sm:$0xff]  ;;  %v313_v32 = vadd.s32 512, %v2088_v19  ;;  %v318_v15 = vadd.s32 1152, %v2088_v19 }
  0x9f   : > { %1441 = vmatpush3.bf16.msra.mxu1 %v712_v33  ;;  %1420 = vmatprep.subr.bf16.mxu0 %v705_v34  ;;  %v398_v23 = vsel %vm382_vm10, %v2201_v42, 0  ;;  %v499_v26 = vld [vmem:[%s2056_s10 + $0x2e0] sm:$0xff]  ;;  %v500_v27 = vld [vmem:[%s2056_s10 + $0x2e8] sm:$0xff]  ;;  %v700_v33 = vpack.c.bf16 %v482_v21, %v481_v20  ;;  %v315_v34 = vadd.s32 768, %v2088_v19  ;;  %v716_v38 = vpack.c.bf16 %v514_v25, %v513_v22  ;;  %v501_v46 = vld [vmem:[%s2056_s10 + $0x2f0] sm:$0xff] }
  0xa0   : > { %1442 = vmatprep.subr.bf16.mxu1 %v721_v41  ;;  %944 = vmatprep.mubr.bf16.mxu1 %v398_v23  ;;  %v531_v28 = vld [vmem:[%s2056_s10 + $0x3e0] sm:$0xff]  ;;  %v532_v31 = vld [vmem:[%s2056_s10 + $0x3e8] sm:$0xff]  ;;  %v709_v39 = vpack.c.bf16 %v500_v27, %v499_v26  ;;  %v502_v47 = vld [vmem:[%s2056_s10 + $0x2f8] sm:$0xff]  ;;  %vm330_vm14 = vcmp.ge.s32.totalorder %v313_v32, %v2083_v14  ;;  %vm347_vm15 = vcmp.lt.s32.totalorder %v313_v32, %v2106_v36  ;;  %v320_v21 = vadd.s32 1408, %v2088_v19 }
  0xa1   : > { %v483_v40 = vld [vmem:[%s2056_s10 + $0x260] sm:$0xff]  ;;  %v484_v41 = vld [vmem:[%s2056_s10 + $0x268] sm:$0xff]  ;;  %v725_v44 = vpack.c.bf16 %v532_v31, %v531_v28  ;;  %v533_v48 = vld [vmem:[%s2056_s10 + $0x3f0] sm:$0xff]  ;;  %vm332_vm11 = vcmp.ge.s32.totalorder %v315_v34, %v2083_v14  ;;  %vm349_vm12 = vcmp.lt.s32.totalorder %v315_v34, %v2106_v36  ;;  %v710_v54 = vpack.c.bf16 %v502_v47, %v501_v46 }
  0xa2   : > { %1421 = vmatpush3.bf16.msra.mxu0 %v697_v49  ;;  %v515_v43 = vld [vmem:[%s2056_s10 + $0x360] sm:$0xff]  ;;  %v516_v45 = vld [vmem:[%s2056_s10 + $0x368] sm:$0xff]  ;;  %v534_v49 = vld [vmem:[%s2056_s10 + $0x3f8] sm:$0xff]  ;;  %v701_v50 = vpack.c.bf16 %v484_v41, %v483_v40 }
  0xa3   : > { %1443 = vmatpush3.bf16.msra.mxu1 %v713_v52  ;;  %1422 = vmatprep.subr.bf16.mxu0 %v706_v53  ;;  %v485_v52 = vld [vmem:[%s2056_s10 + $0x270] sm:$0xff]  ;;  %v717_v53 = vpack.c.bf16 %v516_v45, %v515_v43  ;;  %v486_v55 = vld [vmem:[%s2056_s10 + $0x278] sm:$0xff]  ;;  %v726_v58 = vpack.c.bf16 %v534_v49, %v533_v48  ;;  %vm2351_vm8 = vmand %vm330_vm14, %vm347_vm15  ;;  %vm335_vm15 = vcmp.ge.s32.totalorder %v318_v15, %v2083_v14 }
  0xa4   : > { %1444 = vmatprep.subr.bf16.mxu1 %v722_v57  ;;  %v517_v56 = vld [vmem:[%s2056_s10 + $0x370] sm:$0xff]  ;;  %v518_v57 = vld [vmem:[%s2056_s10 + $0x378] sm:$0xff]  ;;  %v551_v61 = vld [vmem:[%s2056_s10 + $0x480] sm:$0xff]  ;;  %v702_v4 = vpack.c.bf16 %v486_v55, %v485_v52 }
  0xa5   : > { %v552_v63 = vld [vmem:[%s2056_s10 + $0x488] sm:$0xff]  ;;  %vm2357_vm13 = vmand %vm332_vm11, %vm349_vm12  ;;  %v718_v7 = vpack.c.bf16 %v518_v57, %v517_v56  ;;  %v553_v12 = vld [vmem:[%s2056_s10 + $0x490] sm:$0xff]  ;;  %vm352_vm11 = vcmp.lt.s32.totalorder %v318_v15, %v2106_v36  ;;  %vm337_vm12 = vcmp.ge.s32.totalorder %v320_v21, %v2083_v14 }
  0xa6   : > { %1423 = vmatpush3.bf16.msra.mxu0 %v698_v1  ;;  %v583_v1 = vld [vmem:[%s2056_s10 + $0x580] sm:$0xff]  ;;  %v584_v3 = vld [vmem:[%s2056_s10 + $0x588] sm:$0xff]  ;;  %vm379_vm10 = vmpackc.low %vm2351_vm8, %vm2351_vm8  ;;  %v735_v8 = vpack.c.bf16 %v552_v63, %v551_v61  ;;  %vm354_vm8 = vcmp.lt.s32.totalorder %v320_v21, %v2106_v36 }
  0xa7   : > { %1445 = vmatpush3.bf16.msra.mxu1 %v714_v5  ;;  %1424 = vmatprep.subr.bf16.mxu0 %v707_v6  ;;  %v535_v5 = vld [vmem:[%s2056_s10 + $0x400] sm:$0xff]  ;;  %v536_v6 = vld [vmem:[%s2056_s10 + $0x408] sm:$0xff]  ;;  %vm381_vm14 = vmpackc.low %vm2357_vm13, %vm2357_vm13  ;;  %v751_v11 = vpack.c.bf16 %v584_v3, %v583_v1 }
  0xa8   : > { %1446 = vmatprep.subr.bf16.mxu1 %v723_v9  ;;  %v567_v9 = vld [vmem:[%s2056_s10 + $0x500] sm:$0xff]  ;;  %v568_v10 = vld [vmem:[%s2056_s10 + $0x508] sm:$0xff]  ;;  %v554_v13 = vld [vmem:[%s2056_s10 + $0x498] sm:$0xff]  ;;  %v727_v20 = vpack.c.bf16 %v536_v6, %v535_v5  ;;  %v397_v22 = vsel %vm381_vm14, %v2255_v2, 0 }
  0xa9   : > { %v743_v23 = vpack.c.bf16 %v568_v10, %v567_v9  ;;  %v537_v25 = vld [vmem:[%s2056_s10 + $0x410] sm:$0xff]  ;;  %v538_v26 = vld [vmem:[%s2056_s10 + $0x418] sm:$0xff]  ;;  %v555_v32 = vld [vmem:[%s2056_s10 + $0x4a0] sm:$0xff] }
  0xaa   : > { %1425 = vmatpush3.bf16.msra.mxu0 %v699_v16  ;;  %v585_v16 = vld [vmem:[%s2056_s10 + $0x590] sm:$0xff]  ;;  %v570_v31 = vld [vmem:[%s2056_s10 + $0x518] sm:$0xff]  ;;  %v587_v19 = vld [vmem:[%s2056_s10 + $0x5a0] sm:$0xff] }
  0xab   : > { %1447 = vmatpush3.bf16.msra.mxu1 %v715_v17  ;;  %1426 = vmatprep.subr.bf16.mxu0 %v708_v18  ;;  %v586_v17 = vld [vmem:[%s2056_s10 + $0x598] sm:$0xff]  ;;  %v395_v18 = vsel %vm379_vm10, %v2255_v2, 0  ;;  %v569_v27 = vld [vmem:[%s2056_s10 + $0x510] sm:$0xff]  ;;  %v588_v34 = vld [vmem:[%s2056_s10 + $0x5a8] sm:$0xff] }
  0xac   : > { %1448 = vmatprep.subr.bf16.mxu1 %v724_v24  ;;  %v736_v24 = vpack.c.bf16 %v554_v13, %v553_v12  ;;  %v752_v28 = vpack.c.bf16 %v586_v17, %v585_v16  ;;  %v540_v40 = vld [vmem:[%s2056_s10 + $0x428] sm:$0xff]  ;;  %v744_v41 = vpack.c.bf16 %v570_v31, %v569_v27  ;;  %vm368_vm13 = vmand %vm335_vm15, %vm352_vm11  ;;  %v753_v46 = vpack.c.bf16 %v588_v34, %v587_v19  ;;  %v557_v47 = vld [vmem:[%s2056_s10 + $0x4b0] sm:$0xff] }
  0xad   : > { %v572_v45 = vld [vmem:[%s2056_s10 + $0x528] sm:$0xff]  ;;  %v558_v48 = vld [vmem:[%s2056_s10 + $0x4b8] sm:$0xff]  ;;  %vm384_vm10 = vmpackc.low %vm368_vm13, %vm368_vm13 }
  0xae   : > { %1427 = vmatpush3.bf16.msra.mxu0 %v700_v33  ;;  %v556_v33 = vld [vmem:[%s2056_s10 + $0x4a8] sm:$0xff]  ;;  %v589_v49 = vld [vmem:[%s2056_s10 + $0x5b0] sm:$0xff]  ;;  %v400_v52 = vsel %vm384_vm10, %v2201_v42, 0  ;;  %vm370_vm14 = vmand %vm337_vm12, %vm354_vm8  ;;  %v738_v56 = vpack.c.bf16 %v558_v48, %v557_v47  ;;  %vm2740_vm8 = vcmp.ge.s32.totalorder %v2149_v62, %v2083_v14 }
  0xaf   : > { %1449 = vmatpush3.bf16.msra.mxu1 %v716_v38  ;;  %1428 = vmatprep.subr.bf16.mxu0 %v709_v39  ;;  %v728_v38 = vpack.c.bf16 %v538_v26, %v537_v25  ;;  %v539_v39 = vld [vmem:[%s2056_s10 + $0x420] sm:$0xff]  ;;  %v737_v43 = vpack.c.bf16 %v556_v33, %v555_v32  ;;  %vm386_vm15 = vmpackc.low %vm370_vm14, %vm370_vm14  ;;  %v542_v57 = vld [vmem:[%s2056_s10 + $0x438] sm:$0xff] }
  0xb0   : > { %1450 = vmatprep.subr.bf16.mxu1 %v725_v44  ;;  %v571_v44 = vld [vmem:[%s2056_s10 + $0x520] sm:$0xff]  ;;  %v402_v60 = vsel %vm386_vm15, %v2201_v42, 0  ;;  %vm2420_vm11 = vmand %vm334_vm0, %vm351_vm1  ;;  %v574_v0 = vld [vmem:[%s2056_s10 + $0x538] sm:$0xff]  ;;  %vm296_vm15 = vcmask 7168  }
  0xb1   : > { %v745_v55 = vpack.c.bf16 %v572_v45, %v571_v44  ;;  %v559_v1 = vld [vmem:[%s2056_s10 + $0x4c0] sm:$0xff]  ;;  %v560_v3 = vld [vmem:[%s2056_s10 + $0x4c8] sm:$0xff]  ;;  %vm2435_vm0 = vmand %vm336_vm2, %vm353_vm3 }
  0xb2   : > { %1429 = vmatpush3.bf16.msra.mxu0 %v701_v50  ;;  %v590_v50 = vld [vmem:[%s2056_s10 + $0x5b8] sm:$0xff]  ;;  %v592_v5 = vld [vmem:[%s2056_s10 + $0x5c8] sm:$0xff]  ;;  %v543_v9 = vld [vmem:[%s2056_s10 + $0x440] sm:$0xff] }
  0xb3   : > { %1451 = vmatpush3.bf16.msra.mxu1 %v717_v53  ;;  %1430 = vmatprep.subr.bf16.mxu0 %v710_v54  ;;  %v729_v53 = vpack.c.bf16 %v540_v40, %v539_v39  ;;  %v541_v54 = vld [vmem:[%s2056_s10 + $0x430] sm:$0xff]  ;;  %v754_v63 = vpack.c.bf16 %v590_v50, %v589_v49  ;;  %v544_v10 = vld [vmem:[%s2056_s10 + $0x448] sm:$0xff]  ;;  %v562_v15 = vld [vmem:[%s2056_s10 + $0x4d8] sm:$0xff] }
  0xb4   : > { %1452 = vmatprep.subr.bf16.mxu1 %v726_v58  ;;  %v573_v58 = vld [vmem:[%s2056_s10 + $0x530] sm:$0xff]  ;;  %v730_v6 = vpack.c.bf16 %v542_v57, %v541_v54  ;;  %v576_v12 = vld [vmem:[%s2056_s10 + $0x548] sm:$0xff]  ;;  %v594_v17 = vld [vmem:[%s2056_s10 + $0x5d8] sm:$0xff] }
  0xb5   : > { %v561_v13 = vld [vmem:[%s2056_s10 + $0x4d0] sm:$0xff]  ;;  %v578_v26 = vld [vmem:[%s2056_s10 + $0x558] sm:$0xff]  ;;  %v563_v27 = vld [vmem:[%s2056_s10 + $0x4e0] sm:$0xff] }
  0xb6   : > { %1431 = vmatpush3.bf16.msra.mxu0 %v702_v4  ;;  %v591_v4 = vld [vmem:[%s2056_s10 + $0x5c0] sm:$0xff]  ;;  %v593_v16 = vld [vmem:[%s2056_s10 + $0x5d0] sm:$0xff]  ;;  %v740_v21 = vpack.c.bf16 %v562_v15, %v561_v13  ;;  %v596_v32 = vld [vmem:[%s2056_s10 + $0x5e8] sm:$0xff] }
  0xb7   : > { %1453 = vmatpush3.bf16.msra.mxu1 %v718_v7  ;;  %1460 = vmatprep.subr.bf16.mxu0 %v735_v8  ;;  %v746_v7 = vpack.c.bf16 %v574_v0, %v573_v58  ;;  %v739_v8 = vpack.c.bf16 %v560_v3, %v559_v1  ;;  %v755_v30 = vpack.c.bf16 %v592_v5, %v591_v4  ;;  %v595_v31 = vld [vmem:[%s2056_s10 + $0x5e0] sm:$0xff]  ;;  %v548_v39 = vld [vmem:[%s2056_s10 + $0x468] sm:$0xff]  ;;  %v565_v44 = vld [vmem:[%s2056_s10 + $0x4f0] sm:$0xff] }
  0xb8   : > { %1482 = vmatprep.subr.bf16.mxu1 %v751_v11  ;;  %v575_v11 = vld [vmem:[%s2056_s10 + $0x540] sm:$0xff]  ;;  %v756_v25 = vpack.c.bf16 %v594_v17, %v593_v16  ;;  %v566_v45 = vld [vmem:[%s2056_s10 + $0x4f8] sm:$0xff]  ;;  %v581_v54 = vld [vmem:[%s2056_s10 + $0x570] sm:$0xff] }
  0xb9   : > { %905 = vmatmul.mubr.bf16.vlgmr.msra.gmra.mrb[4].mxu0 %v395_v18  ;;  %v731_v18 = vpack.c.bf16 %v544_v10, %v543_v9  ;;  %v579_v40 = vld [vmem:[%s2056_s10 + $0x560] sm:$0xff]  ;;  %v598_v47 = vld [vmem:[%s2056_s10 + $0x5f8] sm:$0xff]  ;;  %v742_v50 = vpack.c.bf16 %v566_v45, %v565_v44  ;;  %v616_v58 = vld [vmem:[%s2056_s10 + $0x688] sm:$0xff] }
  0xba   : > { %945 = vmatmul.mubr.bf16.vlgmr.msra.gmra.mrb[4].mxu1 %v397_v22  ;;  %1461 = vmatpush3.bf16.msra.mxu0 %v727_v20  ;;  %v747_v20 = vpack.c.bf16 %v576_v12, %v575_v11  ;;  %v545_v22 = vld [vmem:[%s2056_s10 + $0x450] sm:$0xff]  ;;  %v615_v57 = vld [vmem:[%s2056_s10 + $0x680] sm:$0xff]  ;;  %vm383_vm1 = vmpackc.low %vm2420_vm11, %vm2420_vm11  ;;  %vm1863_vm11 = vmmov 0  }
  0xbb   : > { %1483 = vmatpush3.bf16.msra.mxu1 %v743_v23  ;;  %1462 = vmatprep.subr.bf16.mxu0 %v736_v24  ;;  %v546_v23 = vld [vmem:[%s2056_s10 + $0x458] sm:$0xff]  ;;  %v577_v24 = vld [vmem:[%s2056_s10 + $0x550] sm:$0xff]  ;;  %vm385_vm2 = vmpackc.low %vm2435_vm0, %vm2435_vm0  ;;  %v767_v5 = vpack.c.bf16 %v616_v58, %v615_v57  ;;  %v399_v13 = vsel %vm383_vm1, %v2255_v2, 0  ;;  %vm1234_vm0 = vcmask 64512  }
  0xbc   : > { %1484 = vmatprep.subr.bf16.mxu1 %v752_v28  ;;  %984 = vmatprep.mubr.bf16.mxu0 %v400_v52  ;;  %v564_v28 = vld [vmem:[%s2056_s10 + $0x4e8] sm:$0xff]  ;;  %v732_v33 = vpack.c.bf16 %v546_v23, %v545_v22  ;;  %v748_v19 = vpack.c.bf16 %v578_v26, %v577_v24  ;;  %v549_v52 = vld [vmem:[%s2056_s10 + $0x470] sm:$0xff]  ;;  %v599_v1 = vld [vmem:[%s2056_s10 + $0x600] sm:$0xff]  ;;  %v401_v51 = vsel %vm385_vm2, %v2255_v2, 0 }
  0xbd   : > { %1024 = vmatprep.mubr.bf16.mxu1 %v402_v60  ;;  %v741_v34 = vpack.c.bf16 %v564_v28, %v563_v27  ;;  %v647_v60 = vld [vmem:[%s2056_s10 + $0x780] sm:$0xff]  ;;  %v600_v3 = vld [vmem:[%s2056_s10 + $0x608] sm:$0xff]  ;;  %vm2487_vm3 = vmand %vm339_vm4, %vm356_vm5 }
  0xbe   : > { %1463 = vmatpush3.bf16.msra.mxu0 %v728_v38  ;;  %v547_v38 = vld [vmem:[%s2056_s10 + $0x460] sm:$0xff]  ;;  %v617_v10 = vld [vmem:[%s2056_s10 + $0x690] sm:$0xff]  ;;  %v618_v11 = vld [vmem:[%s2056_s10 + $0x698] sm:$0xff]  ;;  %v759_v15 = vpack.c.bf16 %v600_v3, %v599_v1 }
  0xbf   : > { %1485 = vmatpush3.bf16.msra.mxu1 %v744_v41  ;;  %1464 = vmatprep.subr.bf16.mxu0 %v737_v43  ;;  %v757_v41 = vpack.c.bf16 %v596_v32, %v595_v31  ;;  %v580_v43 = vld [vmem:[%s2056_s10 + $0x568] sm:$0xff]  ;;  %v733_v48 = vpack.c.bf16 %v548_v39, %v547_v38  ;;  %vm388_vm12 = vmpackc.low %vm2487_vm3, %vm2487_vm3  ;;  %v650_v12 = vld [vmem:[%s2056_s10 + $0x798] sm:$0xff]  ;;  %v768_v17 = vpack.c.bf16 %v618_v11, %v617_v10 }
  0xc0   : > { %1486 = vmatprep.subr.bf16.mxu1 %v753_v46  ;;  %v597_v46 = vld [vmem:[%s2056_s10 + $0x5f0] sm:$0xff]  ;;  %v749_v49 = vpack.c.bf16 %v580_v43, %v579_v40  ;;  %vm2504_vm4 = vmand %vm341_vm6, %vm358_vm7  ;;  %vm2736_vm6 = vcmp.ge.s32.totalorder %v2146_v59, %v2083_v14  ;;  %v634_v29 = vld [vmem:[%s2056_s10 + $0x718] sm:$0xff]  ;;  %v404_v59 = vsel %vm388_vm12, %v2201_v42, 0 }
  0xc1   : > { %v601_v16 = vld [vmem:[%s2056_s10 + $0x610] sm:$0xff]  ;;  %vm390_vm5 = vmpackc.low %vm2504_vm4, %vm2504_vm4  ;;  %v619_v23 = vld [vmem:[%s2056_s10 + $0x6a0] sm:$0xff] }
  0xc2   : > { %1465 = vmatpush3.bf16.msra.mxu0 %v729_v53  ;;  %v550_v53 = vld [vmem:[%s2056_s10 + $0x478] sm:$0xff]  ;;  %vm2532_vm7 = vmand %vm2736_vm6, %vm355_vm9  ;;  %v620_v24 = vld [vmem:[%s2056_s10 + $0x6a8] sm:$0xff]  ;;  %vm2739_vm9 = vcmp.lt.s32.totalorder %v2149_v62, %v2106_v36  ;;  %v406_v36 = vsel %vm390_vm5, %v2201_v42, 0 }
  0xc3   : > { %1487 = vmatpush3.bf16.msra.mxu1 %v745_v55  ;;  %1466 = vmatprep.subr.bf16.mxu0 %v738_v56  ;;  %v758_v55 = vpack.c.bf16 %v598_v47, %v597_v46  ;;  %v582_v56 = vld [vmem:[%s2056_s10 + $0x578] sm:$0xff]  ;;  %v734_v0 = vpack.c.bf16 %v550_v53, %v549_v52  ;;  %v652_v26 = vld [vmem:[%s2056_s10 + $0x7a8] sm:$0xff]  ;;  %vm2553_vm13 = vmand %vm2740_vm8, %vm2739_vm9  ;;  %v769_v62 = vpack.c.bf16 %v620_v24, %v619_v23 }
  0xc4   : > { %1488 = vmatprep.subr.bf16.mxu1 %v754_v63  ;;  %v648_v63 = vld [vmem:[%s2056_s10 + $0x788] sm:$0xff]  ;;  %v750_v4 = vpack.c.bf16 %v582_v56, %v581_v54  ;;  %v603_v31 = vld [vmem:[%s2056_s10 + $0x620] sm:$0xff]  ;;  %v621_v38 = vld [vmem:[%s2056_s10 + $0x6b0] sm:$0xff] }
  0xc5   : > { %v783_v9 = vpack.c.bf16 %v648_v63, %v647_v60  ;;  %v604_v32 = vld [vmem:[%s2056_s10 + $0x628] sm:$0xff]  ;;  %v622_v39 = vld [vmem:[%s2056_s10 + $0x6b8] sm:$0xff]  ;;  %v653_v40 = vld [vmem:[%s2056_s10 + $0x7b0] sm:$0xff] }
  0xc6   : > { %1467 = vmatpush3.bf16.msra.mxu0 %v730_v6  ;;  %v631_v6 = vld [vmem:[%s2056_s10 + $0x700] sm:$0xff]  ;;  %v654_v42 = vld [vmem:[%s2056_s10 + $0x7b8] sm:$0xff]  ;;  %v770_v44 = vpack.c.bf16 %v622_v39, %v621_v38  ;;  %v605_v45 = vld [vmem:[%s2056_s10 + $0x630] sm:$0xff] }
  0xc7   : > { %1489 = vmatpush3.bf16.msra.mxu1 %v746_v7  ;;  %1468 = vmatprep.subr.bf16.mxu0 %v739_v8  ;;  %v632_v7 = vld [vmem:[%s2056_s10 + $0x708] sm:$0xff]  ;;  %v606_v46 = vld [vmem:[%s2056_s10 + $0x638] sm:$0xff]  ;;  %v637_v47 = vld [vmem:[%s2056_s10 + $0x730] sm:$0xff] }
  0xc8   : > { %1490 = vmatprep.subr.bf16.mxu1 %v755_v30  ;;  %v649_v30 = vld [vmem:[%s2056_s10 + $0x790] sm:$0xff]  ;;  %v775_v61 = vpack.c.bf16 %v632_v7, %v631_v6  ;;  %v624_v52 = vld [vmem:[%s2056_s10 + $0x6c8] sm:$0xff]  ;;  %v655_v53 = vld [vmem:[%s2056_s10 + $0x7c0] sm:$0xff] }
  0xc9   : > { %v784_v22 = vpack.c.bf16 %v650_v12, %v649_v30  ;;  %v656_v54 = vld [vmem:[%s2056_s10 + $0x7c8] sm:$0xff]  ;;  %v607_v58 = vld [vmem:[%s2056_s10 + $0x640] sm:$0xff]  ;;  %v625_v3 = vld [vmem:[%s2056_s10 + $0x6d0] sm:$0xff] }
  0xca   : > { %1469 = vmatpush3.bf16.msra.mxu0 %v731_v18  ;;  %v602_v18 = vld [vmem:[%s2056_s10 + $0x618] sm:$0xff]  ;;  %v608_v60 = vld [vmem:[%s2056_s10 + $0x648] sm:$0xff]  ;;  %v639_v63 = vld [vmem:[%s2056_s10 + $0x740] sm:$0xff] }
  0xcb   : > { %1491 = vmatpush3.bf16.msra.mxu1 %v747_v20  ;;  %1470 = vmatprep.subr.bf16.mxu0 %v740_v21  ;;  %v633_v20 = vld [vmem:[%s2056_s10 + $0x710] sm:$0xff]  ;;  %v760_v28 = vpack.c.bf16 %v602_v18, %v601_v16  ;;  %v640_v1 = vld [vmem:[%s2056_s10 + $0x748] sm:$0xff]  ;;  %v658_v6 = vld [vmem:[%s2056_s10 + $0x7d8] sm:$0xff]  ;;  %v763_v7 = vpack.c.bf16 %v608_v60, %v607_v58 }
  0xcc   : > { %1492 = vmatprep.subr.bf16.mxu1 %v756_v25  ;;  %v651_v25 = vld [vmem:[%s2056_s10 + $0x7a0] sm:$0xff]  ;;  %v776_v14 = vpack.c.bf16 %v634_v29, %v633_v20  ;;  %v779_v8 = vpack.c.bf16 %v640_v1, %v639_v63  ;;  %v609_v10 = vld [vmem:[%s2056_s10 + $0x650] sm:$0xff]  ;;  %v610_v11 = vld [vmem:[%s2056_s10 + $0x658] sm:$0xff] }
  0xcd   : > { %v641_v30 = vld [vmem:[%s2056_s10 + $0x750] sm:$0xff]  ;;  %v642_v37 = vld [vmem:[%s2056_s10 + $0x758] sm:$0xff]  ;;  %v659_v16 = vld [vmem:[%s2056_s10 + $0x7e0] sm:$0xff] }
  0xce   : > { %1471 = vmatpush3.bf16.msra.mxu0 %v732_v33  ;;  %v635_v33 = vld [vmem:[%s2056_s10 + $0x720] sm:$0xff]  ;;  %v644_v24 = vld [vmem:[%s2056_s10 + $0x768] sm:$0xff]  ;;  %vm387_vm10 = vmpackc.low %vm2532_vm7, %vm2532_vm7 }
  0xcf   : > { %1493 = vmatpush3.bf16.msra.mxu1 %v748_v19  ;;  %1472 = vmatprep.subr.bf16.mxu0 %v741_v34  ;;  %v785_v19 = vpack.c.bf16 %v652_v26, %v651_v25  ;;  %v636_v34 = vld [vmem:[%s2056_s10 + $0x728] sm:$0xff]  ;;  %v611_v20 = vld [vmem:[%s2056_s10 + $0x660] sm:$0xff]  ;;  %v629_v25 = vld [vmem:[%s2056_s10 + $0x6f0] sm:$0xff] }
  0xd0   : > { %1494 = vmatprep.subr.bf16.mxu1 %v757_v41  ;;  %v761_v41 = vpack.c.bf16 %v604_v32, %v603_v31  ;;  %v777_v43 = vpack.c.bf16 %v636_v34, %v635_v33  ;;  %v643_v29 = vld [vmem:[%s2056_s10 + $0x760] sm:$0xff]  ;;  %v630_v26 = vld [vmem:[%s2056_s10 + $0x6f8] sm:$0xff]  ;;  %v613_v31 = vld [vmem:[%s2056_s10 + $0x670] sm:$0xff] }
  0xd1   : > { %v614_v32 = vld [vmem:[%s2056_s10 + $0x678] sm:$0xff]  ;;  %vm389_vm14 = vmpackc.low %vm2553_vm13, %vm2553_vm13 }
  0xd2   : > { %1473 = vmatpush3.bf16.msra.mxu0 %v733_v48  ;;  %v786_v48 = vpack.c.bf16 %v654_v42, %v653_v40  ;;  %v646_v34 = vld [vmem:[%s2056_s10 + $0x778] sm:$0xff]  ;;  %v766_v38 = vpack.c.bf16 %v614_v32, %v613_v31  ;;  %v403_v40 = vsel %vm387_vm10, %v2255_v2, 0  ;;  %v405_v42 = vsel %vm389_vm14, %v2255_v2, 0 }
  0xd3   : > { %1495 = vmatpush3.bf16.msra.mxu1 %v749_v49  ;;  %1474 = vmatprep.subr.bf16.mxu0 %v742_v50  ;;  %v638_v49 = vld [vmem:[%s2056_s10 + $0x738] sm:$0xff]  ;;  %v623_v50 = vld [vmem:[%s2056_s10 + $0x6c0] sm:$0xff]  ;;  %v1861_v31 = vmov 0  }
  0xd4   : > { %1496 = vmatprep.subr.bf16.mxu1 %v758_v55  ;;  %v762_v55 = vpack.c.bf16 %v606_v46, %v605_v45  ;;  %v778_v56 = vpack.c.bf16 %v638_v49, %v637_v47  ;;  %v771_v57 = vpack.c.bf16 %v624_v52, %v623_v50  ;;  %1701 = vset.pattern.permute.xlu1 %v1861_v31  ;;  %v1141_v32 = vld [vmem:[%s2694_s2] sm:$0xff] }
  0xd5   : > { %1702 = vset.pattern.permute.xlu0 %v1861_v31 }
  0xd6   : > { %1475 = vmatpush3.bf16.msra.mxu0 %v734_v0  ;;  %v787_v0 = vpack.c.bf16 %v656_v54, %v655_v53 }
  0xd7   : > { %1497 = vmatpush3.bf16.msra.mxu1 %v750_v4  ;;  %1504 = vmatprep.subr.bf16.mxu0 %v767_v5  ;;  %v626_v4 = vld [vmem:[%s2056_s10 + $0x6d8] sm:$0xff]  ;;  %v657_v5 = vld [vmem:[%s2056_s10 + $0x7d0] sm:$0xff] }
  0xd8   : > { %1526 = vmatprep.subr.bf16.mxu1 %v783_v9  ;;  %v772_v9 = vpack.c.bf16 %v626_v4, %v625_v3  ;;  %v788_v12 = vpack.c.bf16 %v658_v6, %v657_v5 }
  0xd9   : > { %985 = vmatmul.mubr.bf16.vlgmr.msra.gmra.mrb[8].mxu0 %v399_v13  ;;  %v627_v13 = vld [vmem:[%s2056_s10 + $0x6e0] sm:$0xff] }
  0xda   : > { %1025 = vmatmul.mubr.bf16.vlgmr.msra.gmra.mrb[8].mxu1 %v401_v51  ;;  %1505 = vmatpush3.bf16.msra.mxu0 %v759_v15  ;;  %v628_v15 = vld [vmem:[%s2056_s10 + $0x6e8] sm:$0xff] }
  0xdb   : > { %1527 = vmatpush3.bf16.msra.mxu1 %v775_v61  ;;  %1506 = vmatprep.subr.bf16.mxu0 %v768_v17  ;;  %v660_v51 = vld [vmem:[%s2056_s10 + $0x7e8] sm:$0xff]  ;;  %v764_v61 = vpack.c.bf16 %v610_v11, %v609_v10  ;;  %v780_v17 = vpack.c.bf16 %v642_v37, %v641_v30  ;;  %v773_v18 = vpack.c.bf16 %v628_v15, %v627_v13 }
  0xdc   : > { %1528 = vmatprep.subr.bf16.mxu1 %v784_v22  ;;  %1064 = vmatprep.mubr.bf16.mxu0 %v404_v59  ;;  %v612_v22 = vld [vmem:[%s2056_s10 + $0x668] sm:$0xff]  ;;  %v789_v23 = vpack.c.bf16 %v660_v51, %v659_v16  ;;  %v661_v59 = vld [vmem:[%s2056_s10 + $0x7f0] sm:$0xff] }
  0xdd   : > { %1104 = vmatprep.mubr.bf16.mxu1 %v406_v36  ;;  %v765_v36 = vpack.c.bf16 %v612_v22, %v611_v20 }
  0xde   : > { %1507 = vmatpush3.bf16.msra.mxu0 %v760_v28  ;;  %v662_v28 = vld [vmem:[%s2056_s10 + $0x7f8] sm:$0xff] }
  0xdf   : > { %1529 = vmatpush3.bf16.msra.mxu1 %v776_v14  ;;  %1508 = vmatprep.subr.bf16.mxu0 %v769_v62  ;;  %v781_v14 = vpack.c.bf16 %v644_v24, %v643_v29  ;;  %v774_v62 = vpack.c.bf16 %v630_v26, %v629_v25  ;;  %v790_v33 = vpack.c.bf16 %v662_v28, %v661_v59 }
  0xe0   : > { %1530 = vmatprep.subr.bf16.mxu1 %v785_v19  ;;  %v645_v19 = vld [vmem:[%s2056_s10 + $0x770] sm:$0xff] }
  0xe1   : > { %v782_v39 = vpack.c.bf16 %v646_v34, %v645_v19  ;;  %v1143_v19 = vld [vmem:[%s2694_s2 + $0x10] sm:$0xff]  ;;  %v1862_v34 = vmov 0.0|0.0  }
  0xe2   : > { %1509 = vmatpush3.bf16.msra.mxu0 %v761_v41  ;;  %v1115_v41 = vunpack.c.l.bf16 %v2187_v35 }
  0xe3   : > { %1531 = vmatpush3.bf16.msra.mxu1 %v777_v43  ;;  %1510 = vmatprep.subr.bf16.mxu0 %v770_v44  ;;  %v1116_v43 = vunpack.c.h.bf16 %v2187_v35  ;;  %v1860_v44 = vmov 0.0  }
  0xe4   : > { %1532 = vmatprep.subr.bf16.mxu1 %v786_v48  ;;  %297 = vst.msk [vmem:[#allocation3] sm:$0xff] %vm296_vm15, %v1860_v44 }
  0xe5   : > { %v1117_v21 = vadd.f32 %v1116_v43, %v1115_v41  ;;  %v1146_v41 = vld [vmem:[%s2694_s2 + $0x28] sm:$0xff] }
  0xe6   : > { %1511 = vmatpush3.bf16.msra.mxu0 %v762_v55 }
  0xe7   : > { %1533 = vmatpush3.bf16.msra.mxu1 %v778_v56  ;;  %1512 = vmatprep.subr.bf16.mxu0 %v771_v57 }
  0xe8   : > { %1534 = vmatprep.subr.bf16.mxu1 %v787_v0  ;;  %1118 = vadd.xlane.f32.xlu0 %v1117_v21  ;;  %v1147_v21 = vld [vmem:[%s2694_s2 + $0x30] sm:$0xff] }
  0xea   : > { %1513 = vmatpush3.bf16.msra.mxu0 %v763_v7 }
  0xeb   : > { %1535 = vmatpush3.bf16.msra.mxu1 %v779_v8  ;;  %1514 = vmatprep.subr.bf16.mxu0 %v772_v9  ;;  %v1114_v51 = vld [vmem:[#allocation3] sm:$0xff] }
  0xec   : > { %1536 = vmatprep.subr.bf16.mxu1 %v788_v12 }
  0xee   : > { %1515 = vmatpush3.bf16.msra.mxu0 %v764_v61 }
  0xef   : > { %1537 = vmatpush3.bf16.msra.mxu1 %v780_v17  ;;  %1516 = vmatprep.subr.bf16.mxu0 %v773_v18 }
  0xf0   : > { %1538 = vmatprep.subr.bf16.mxu1 %v789_v23 }
  0xf2   : > { %1517 = vmatpush3.bf16.msra.mxu0 %v765_v36 }
  0xf3   : > { %1539 = vmatpush3.bf16.msra.mxu1 %v781_v14  ;;  %1518 = vmatprep.subr.bf16.mxu0 %v774_v62 }
  0xf4   : > { %1540 = vmatprep.subr.bf16.mxu1 %v790_v33  ;;  %v1142_v33 = vld [vmem:[%s2694_s2 + $0x8] sm:$0xff] }
  0xf6   : > { %1519 = vmatpush3.bf16.msra.mxu0 %v766_v38  ;;  %v1601_v38 = vpack.c.bf16 %v1142_v33, %v1141_v32 }
  0xf7   : > { %1541 = vmatpush3.bf16.msra.mxu1 %v782_v39  ;;  %1600 = vmatprep.subr.bf16.mxu0 %v1862_v34  ;;  %v1144_v39 = vld [vmem:[%s2694_s2 + $0x18] sm:$0xff] }
  0xf9   : > { %1065 = vmatmul.mubr.bf16.vlgmr.msra.gmra.mrb[12].mxu0 %v403_v40  ;;  %v1604_v40 = vpack.c.bf16 %v1144_v39, %v1143_v19 }
  0xfa   : > { %1105 = vmatmul.mubr.bf16.vlgmr.msra.gmra.mrb[12].mxu1 %v405_v42  ;;  %1602 = vmatpush3.bf16.msra.mxu0 %v1601_v38  ;;  %v1145_v42 = vld [vmem:[%s2694_s2 + $0x20] sm:$0xff] }
  0xfb   : > { %1603 = vmatprep.subr.bf16.mxu0 %v1862_v34  ;;  %v1607_v43 = vpack.c.bf16 %v1146_v41, %v1145_v42  ;;  %1597 = vmatprep.mubr.msk.f32.mxu0 %vm1863_vm11, %v1860_v44 }
  0xfe   : > { %1605 = vmatpush3.bf16.msra.mxu0 %v1604_v40 }
  0xff   : > { %1606 = vmatprep.subr.bf16.mxu0 %v1862_v34 }
 0x102   : > { %1608 = vmatpush3.bf16.msra.mxu0 %v1607_v43 }
 0x103   : > { %1609 = vmatprep.subr.bf16.mxu0 %v1862_v34 }
 0x16c   : > { %v1388_v27 = vpop.f32.mrb[0].mxu0 }
 0x16d   : > { %v1410_v45 = vpop.f32.mrb[0].mxu1  ;;  %v1389_v46 = vpop.f32.mrb[1].mxu0 }
 0x16e   : > { %v1390_v47 = vadd.f32 %v1389_v46, %v1388_v27  ;;  %v1411_v48 = vpop.f32.mrb[1].mxu1  ;;  %v1391_v49 = vpop.f32.mrb[2].mxu0  ;;  %v1148_v27 = vld [vmem:[%s2694_s2 + $0x38] sm:$0xff]  ;;  %v1149_v46 = vld [vmem:[%s2694_s2 + $0x40] sm:$0xff] }
 0x16f   : > { %v1412_v2 = vadd.f32 %v1411_v48, %v1410_v45  ;;  %v1413_v50 = vpop.f32.mrb[2].mxu1  ;;  %v1392_v52 = vpop.f32.mrb[3].mxu0  ;;  %v1610_v45 = vpack.c.bf16 %v1148_v27, %v1147_v21  ;;  %v1151_v49 = vld [vmem:[%s2694_s2 + $0x50] sm:$0xff] }
 0x170   : > { %v1414_v53 = vpop.f32.mrb[3].mxu1  ;;  %v1153_v52 = vld [vmem:[%s2694_s2 + $0x60] sm:$0xff] }
 0x171   : > { %v867_v54 = vadd.f32 %v1412_v2, %v1390_v47  ;;  %v1150_v47 = vld [vmem:[%s2694_s2 + $0x48] sm:$0xff]  ;;  %1611 = vmatpush3.bf16.msra.mxu0 %v1610_v45  ;;  %v1152_v2 = vld [vmem:[%s2694_s2 + $0x58] sm:$0xff] }
 0x172   : > { %v1613_v48 = vpack.c.bf16 %v1150_v47, %v1149_v46  ;;  %1612 = vmatprep.subr.bf16.mxu0 %v1862_v34  ;;  %v1616_v50 = vpack.c.bf16 %v1152_v2, %v1151_v49  ;;  %v1154_v53 = vld [vmem:[%s2694_s2 + $0x68] sm:$0xff] }
 0x175   : > { %v1119_v61 = vpop.xlane.xlu0 %1118  ;;  %1614 = vmatpush3.bf16.msra.mxu0 %v1613_v48 }
 0x176   : > { %v1120_v17 = vadd.f32 %v1119_v61, %v1114_v51  ;;  %1615 = vmatprep.subr.bf16.mxu0 %v1862_v34 }
 0x178   : > { %1122 = vst.msk [vmem:[#allocation3] sm:$0xff] %vm296_vm15, %v1120_v17 }
 0x179   : > { %1617 = vmatpush3.bf16.msra.mxu0 %v1616_v50 }
 0x17a   : > { %1618 = vmatprep.subr.bf16.mxu0 %v1862_v34 }
 0x18c   : > { %v1432_v55 = vpop.f32.mrb[4].mxu0 }
 0x18d   : > { %v1454_v35 = vpop.f32.mrb[4].mxu1  ;;  %v1433_v56 = vpop.f32.mrb[5].mxu0 }
 0x18e   : > { %v1434_v57 = vadd.f32 %v1433_v56, %v1432_v55  ;;  %v1455_v58 = vpop.f32.mrb[5].mxu1  ;;  %v1435_v60 = vpop.f32.mrb[6].mxu0  ;;  %v1155_v55 = vld [vmem:[%s2694_s2 + $0x70] sm:$0xff] }
 0x18f   : > { %v1456_v63 = vadd.f32 %v1455_v58, %v1454_v35  ;;  %v1457_v0 = vpop.f32.mrb[6].mxu1  ;;  %v1436_v1 = vpop.f32.mrb[7].mxu0  ;;  %v1156_v35 = vld [vmem:[%s2694_s2 + $0x78] sm:$0xff] }
 0x190   : > { %v907_v3 = vadd.f32 %v1434_v57, %v867_v54  ;;  %v1458_v4 = vpop.f32.mrb[7].mxu1  ;;  %v1619_v54 = vpack.c.bf16 %v1154_v53, %v1153_v52  ;;  %v1622_v56 = vpack.c.bf16 %v1156_v35, %v1155_v55  ;;  %v1127_v57 = vld [vmem:[#allocation3] sm:$0xff] }
 0x191   : > { %v1131_v58 = vmul.f32 1e-12, %v1127_v57 }
 0x192   : > { %v947_v5 = vadd.f32 %v1456_v63, %v907_v3  ;;  %1620 = vmatpush3.bf16.msra.mxu0 %v1619_v54 }
 0x193   : > { %1621 = vmatprep.subr.bf16.mxu0 %v1862_v34  ;;  %v1132_v60 = vmul.f32 %v1131_v58, %v1131_v58 }
 0x196   : > { %1623 = vmatpush3.bf16.msra.mxu0 %v1622_v56 }
 0x1ac   : > { %v1476_v6 = vpop.f32.mrb[8].mxu0 }
 0x1ad   : > { %v1498_v7 = vpop.f32.mrb[8].mxu1  ;;  %v1477_v8 = vpop.f32.mrb[9].mxu0 }
 0x1ae   : > { %v1478_v9 = vadd.f32 %v1477_v8, %v1476_v6  ;;  %v1499_v10 = vpop.f32.mrb[9].mxu1  ;;  %v1479_v11 = vpop.f32.mrb[10].mxu0 }
 0x1af   : > { %v1500_v30 = vadd.f32 %v1499_v10, %v1498_v7  ;;  %v1501_v12 = vpop.f32.mrb[10].mxu1  ;;  %v1480_v37 = vpop.f32.mrb[11].mxu0 }
 0x1b0   : > { %v987_v13 = vadd.f32 %v1478_v9, %v947_v5  ;;  %v1502_v15 = vpop.f32.mrb[11].mxu1  ;;  %v1366_v5 = vld [vmem:[#allocation8] ss:$0 sm:$0xff] }
 0x1b2   : > { %v1027_v16 = vadd.f32 %v1500_v30, %v987_v13 }
 0x1cc   : > { %v1520_v18 = vpop.f32.mrb[12].mxu0 }
 0x1cd   : > { %v1542_v20 = vpop.f32.mrb[12].mxu1  ;;  %v1521_v22 = vpop.f32.mrb[13].mxu0 }
 0x1ce   : > { %v1522_v29 = vadd.f32 %v1521_v22, %v1520_v18  ;;  %v1543_v23 = vpop.f32.mrb[13].mxu1  ;;  %v1523_v24 = vpop.f32.mrb[14].mxu0 }
 0x1cf   : > { %v1544_v25 = vadd.f32 %v1543_v23, %v1542_v20  ;;  %v1545_v26 = vpop.f32.mrb[14].mxu1  ;;  %v1524_v59 = vpop.f32.mrb[15].mxu0 }
 0x1d0   : > { %v1067_v28 = vadd.f32 %v1522_v29, %v1027_v16  ;;  %v1546_v36 = vpop.f32.mrb[15].mxu1 }
 0x1d2   : > { %v1107_v14 = vadd.f32 %v1544_v25, %v1067_v28 }
 0x1d4   : > { %v1128_v62 = vmul.f32 %v1107_v14, %v1107_v14 }
 0x1d6   : > { %1129 = vadd.xlane.f32.xlu0 %v1128_v62 }
 0x263   : > { %v1130_v63 = vpop.xlane.xlu0 %1129 }
 0x264   : > { %v1133_v0 = vmax.f32 %v1130_v63, %v1132_v60 }
 0x266   : > { %1705 = vrsqrt.f32 %v1133_v0 }
 0x270   : > { %v1706_v1 = vpop.eup %1705 }
 0x271   : > { %1137 = vperm.xlu1 %1701, %v1706_v1  }
 0x2f0   : > { %v1138_v3 = vpop.permute.xlu1 %1137 }
 0x2f1   : > { %v1140_v4 = vmul.f32 %v1138_v3, %v1107_v14 }
 0x2f3   : > { %1598 = vmatmul.mubr.f32.vlgmr.msra.gmra.mrb[16].mxu0 %v1140_v4 }
 0x3c6   : > { %v1230_v6 = vpop.f32.mrb[16].mxu0 }
 0x3c7   : > { %v1231_v7 = vadd.f32 %v1366_v5, %v1230_v6  ;;  %v1599_v8 = vpop.f32.mrb[17].mxu0 }
 0x3c9   : > { %1235 = vst.msk [vmem:[%s289_s22] sm:$0xff] %vm1234_vm0, %v1231_v7 }
 0x3ca PF: > { %s20_s20 = sadd.s32 1, %s1853_s20   ;;  %s2743_s15 = smov %s1837_s16 }
 0x3cb   : > { %p17_p13 = scmp.ge.s32.totalorder %s20_s20, 4   ;;  %s2744_s16 = smov %s1841_s17 }
 0x3cc   : > { %s2745_s17 = smov %s2024_s5  ;;  %s2746_s18 = smov %s1849_s19 }
 0x3cd   : > { %s2747_s19 = smov %s2749_s26  ;;  %19 = sbr.rel (!%p17_p13) target bundleno = 8 (0x8), region = 101 }
 0x3d4   :  { %1255 = vsyncpa [#allocation5], 1 }
 0x3d5   :  { %1257 = vsyncpa [#allocation5 + $0x1], 1 }
 0x3d6   :  { %1258 = vsyncpa [#allocation7], 1 }
 0x3d7   :  { %1260 = vsyncpa [#allocation7 + $0x1], 1 }

</bundles_post_ra>
